<compile_context>
chip_gen: v7x
topology: tpu7x:2x2x1
jax: 0.10.0
libtpu: 0.0.40
codegen_flags: <defaults>
</compile_context>

<pallas_src>
import functools

import jax
import jax.numpy as jnp
import numpy as np
from jax import lax
from jax.experimental import pallas as pl
from jax.experimental.pallas import tpu as pltpu

GN_EPS = 1e-5          # PyTorch GroupNorm default eps
NUM_GROUPS = 32        # GroupNorm(32, dim)
LANE = 128
MAX_TILE_ROWS = 512    # review: 512+ row tiles hit >=85% of the HBM roofline


def _round_up(x, m):
    return (x + m - 1) // m * m


def _physical_vmem_bytes():
    """Per-generation physical VMEM (64 MiB v7x, 128 MiB v5e/v6e)."""
    try:
        return int(pltpu.get_tpu_info().vmem_capacity_bytes)
    except Exception:               # conservative fallback, valid on every generation
        return 64 << 20


def _pick_tile_rows(hw, cp, phys_vmem):
    """Largest row tile TR with TR | H*W, TR % 8 == 0, TR <= 512 that fits VMEM."""
    budget = int(phys_vmem * 0.6)
    cands = [d for d in range(8, min(hw, MAX_TILE_ROWS) + 1, 8) if hw % d == 0]
    if not cands:
        # TODO(synk): support H*W % 8 != 0 (needs per-frame row padding + stat masking).
        raise NotImplementedError("TemporalConvLayer Pallas kernel requires H*W % 8 == 0")
    for d in sorted(cands, reverse=True):
        # ~3 double-buffered src windows + out window + in-body temporaries + weights.
        if 14 * d * cp * 4 + 3 * cp * cp * 2 <= budget:
            return d
    return cands[0]


def _gn_silu_tconv_kernel(*refs, k_shift, is_last):
    """One row tile of one layer: GroupNorm(folded) -> SiLU -> Conv3d((3,1,1)) taps.

    Non-last layers also emit the tile's (sum, sum_sq) partials for the next layer's
    GroupNorm; the last layer fuses `identity + |temporal_weight| * h` instead.
    """
    if is_last:
        (scale_ref, shift_ref, w_ref, b_ref, tw_ref,
         xc_ref, xprev_ref, xnext_ref, id_ref, o_ref) = refs
    else:
        (scale_ref, shift_ref, w_ref, b_ref,
         xc_ref, xprev_ref, xnext_ref, o_ref, ps_ref) = refs

    j = pl.program_id(1)
    n_tiles = pl.num_programs(1)
    scale = scale_ref[0]           # (1, Cp) f32: gamma * rsqrt(var + eps)
    shift = shift_ref[0]           # (1, Cp) f32: beta - mean * scale

    # First frame has no (t-1) tap, last frame no (t+1) tap.  Zeroing that halo's
    # scale/shift makes its activation SiLU(0) == 0 (cheaper than masking the tile).
    g_prev = jnp.where(j >= k_shift, 1.0, 0.0)
    g_next = jnp.where(j < n_tiles - k_shift, 1.0, 0.0)

    def act(src_ref, gate):
        v = src_ref[0].astype(jnp.float32)               # (TR, Cp)
        xn = v * (scale * gate) + shift * gate           # folded GN affine: single FMA
        return (xn * jax.nn.sigmoid(xn)).astype(jnp.bfloat16)   # SiLU -> bf16 MXU operand

    # Conv3d(C, C, (3,1,1), padding=(1,0,0)): three bf16 matmuls, f32 accumulation,
    # single store per output tile.
    h = jnp.dot(act(xc_ref, 1.0), w_ref[1], preferred_element_type=jnp.float32)
    h = h + jnp.dot(act(xprev_ref, g_prev), w_ref[0], preferred_element_type=jnp.float32)
    h = h + jnp.dot(act(xnext_ref, g_next), w_ref[2], preferred_element_type=jnp.float32)
    h = h + b_ref[...]                                   # (1, Cp) bias broadcast

    if is_last:
        # Dropout(p=0.0) is identity; keep_content_condition=False (default) branch.
        tw = jnp.abs(tw_ref[0, 0])
        o_ref[0] = (id_ref[0].astype(jnp.float32) + tw * h).astype(o_ref.dtype)
    else:
        o_ref[0] = h.astype(o_ref.dtype)
        # Next layer's GroupNorm partial stats, fused into the conv epilogue.
        ps_ref[0, 0] = jnp.concatenate(
            [jnp.sum(h, axis=0, keepdims=True),
             jnp.sum(h * h, axis=0, keepdims=True)], axis=0)


def _fold_gn_affine(s, s2, count, gamma, beta, c, cp):
    """Fold GroupNorm stats + affine into per-channel scale/shift.  s/s2: (B, C)."""
    bsz = s.shape[0]
    gs = c // NUM_GROUPS
    gsum = s.reshape(bsz, NUM_GROUPS, gs).sum(axis=-1)
    gsum2 = s2.reshape(bsz, NUM_GROUPS, gs).sum(axis=-1)
    mean = gsum / count
    var = jnp.maximum(gsum2 / count - mean * mean, 0.0)
    inv = lax.rsqrt(var + GN_EPS)                         # (B, G)
    mean_c = jnp.repeat(mean, gs, axis=1)                 # (B, C)
    inv_c = jnp.repeat(inv, gs, axis=1)
    scale = inv_c * gamma[None, :]
    shift = beta[None, :] - mean_c * scale
    pad = cp - c
    if pad:   # padded channels: scale = shift = 0 -> activation stays exactly zero
        scale = jnp.pad(scale, ((0, 0), (0, pad)))
        shift = jnp.pad(shift, ((0, 0), (0, pad)))
    return (scale.reshape(bsz, 1, cp).astype(jnp.float32),
            shift.reshape(bsz, 1, cp).astype(jnp.float32))


def _run_layer(src, scale, shift, w_l, bias_l, *, tr, k_shift, n_tiles, is_last,
               identity, tweight, phys_vmem, out_dtype):
    """One pallas_call for one GN -> SiLU -> Conv3d layer, grid = (B, row tiles)."""
    b, thw, cp = src.shape
    src_isz = jnp.dtype(src.dtype).itemsize
    dst_isz = jnp.dtype(out_dtype).itemsize
    id_isz = jnp.dtype(identity.dtype).itemsize if is_last else 0

    blk = tr * cp
    need = (2 * 3 * blk * src_isz       # cur/prev/next source windows (double-buffered)
            + 2 * blk * dst_isz         # output window
            + 2 * blk * id_isz          # residual window (last layer only)
            + 8 * blk * 4               # in-body bf16/f32 temporaries (a x3, h, slack)
            + 3 * cp * cp * 2           # resident per-layer weights (bf16)
            + cp * 4 + 4 * 2 * cp * 4   # bias + scale/shift blocks
            + 2 * 2 * 2 * cp * 4)       # psum window
    vmem_limit = int(min(max(need + (4 << 20), 32 << 20), int(phys_vmem * 0.9)))

    cur_spec = pl.BlockSpec((1, tr, cp), lambda i, j: (i, j, 0))
    prev_spec = pl.BlockSpec(
        (1, tr, cp), lambda i, j: (i, jnp.maximum(j - k_shift, 0), 0))
    next_spec = pl.BlockSpec(
        (1, tr, cp), lambda i, j: (i, jnp.minimum(j + k_shift, n_tiles - 1), 0))
    vec_spec = pl.BlockSpec((1, 1, cp), lambda i, j: (i, 0, 0))
    resident = pl.BlockSpec(memory_space=pltpu.MemorySpace.VMEM)   # loaded once

    cost = pl.CostEstimate(
        flops=int(2 * b * n_tiles * 3 * tr * cp * cp),
        transcendentals=int(3 * b * thw * cp),
        bytes_accessed=int(b * thw * cp * (3 * src_isz + dst_isz + id_isz)
                           + 3 * cp * cp * 2),
    )
    compiler_params = pltpu.CompilerParams(
        dimension_semantics=("parallel", "parallel"),   # no cross-step carries
        vmem_limit_bytes=vmem_limit)
    kernel = functools.partial(_gn_silu_tconv_kernel, k_shift=k_shift, is_last=is_last)

    if is_last:
        return pl.pallas_call(
            kernel,
            out_shape=jax.ShapeDtypeStruct((b, thw, cp), out_dtype),
            grid_spec=pltpu.PrefetchScalarGridSpec(
                num_scalar_prefetch=0,
                grid=(b, n_tiles),
                in_specs=[vec_spec, vec_spec, resident, resident,
                          pl.BlockSpec(memory_space=pltpu.MemorySpace.SMEM),  # temporal_weight
                          cur_spec, prev_spec, next_spec, cur_spec],
                out_specs=pl.BlockSpec((1, tr, cp), lambda i, j: (i, j, 0)),
            ),
            compiler_params=compiler_params,
            cost_estimate=cost,
        )(scale, shift, w_l, bias_l, tweight, src, src, src, identity)

    return pl.pallas_call(
        kernel,
        out_shape=(jax.ShapeDtypeStruct((b, thw, cp), jnp.float32),
                   jax.ShapeDtypeStruct((b, n_tiles, 2, cp), jnp.float32)),
        grid_spec=pltpu.PrefetchScalarGridSpec(
            num_scalar_prefetch=0,
            grid=(b, n_tiles),
            in_specs=[vec_spec, vec_spec, resident, resident,
                      cur_spec, prev_spec, next_spec],
            out_specs=[pl.BlockSpec((1, tr, cp), lambda i, j: (i, j, 0)),
                       pl.BlockSpec((1, 1, 2, cp), lambda i, j: (i, j, 0, 0))],
        ),
        compiler_params=compiler_params,
        cost_estimate=cost,
    )(scale, shift, w_l, bias_l, src, src, src)


def temporal_conv_layer(hidden_states, num_frames, params):
    """hidden_states: (B*T, C, H, W) (PyTorch NCHW convention, any float dtype)."""
    bt, c, hh, ww = hidden_states.shape
    b = bt // num_frames
    t = num_frames
    hw = hh * ww
    thw = t * hw
    cp = max(_round_up(c, LANE), LANE)
    pad_c = cp - c
    in_dtype = hidden_states.dtype
    gs = c // NUM_GROUPS
    count = float(thw * gs)

    phys_vmem = _physical_vmem_bytes()
    tr = _pick_tile_rows(hw, cp, phys_vmem)
    k_shift = hw // tr                 # temporal tap shift measured in row tiles
    n_tiles = thw // tr

    # '(b t) c h w' -> (B, T*H*W, C): channels-last, frame-major rows.
    x = hidden_states.reshape(b, t, c, hw).transpose(0, 1, 3, 2).reshape(b, thw, c)
    x32 = x.astype(jnp.float32)
    # Layer-1 GroupNorm stats straight from the input (tiny XLA reduction); layers
    # 2..4 reuse the per-tile partials emitted by the previous layer's conv epilogue.
    s = jnp.sum(x32, axis=1)                       # (B, C)
    s2 = jnp.sum(x32 * x32, axis=1)
    xpad = jnp.pad(x, ((0, 0), (0, 0), (0, pad_c))) if pad_c else x   # (B, THW, Cp)

    def pad_last(p):
        return jnp.pad(p, [(0, 0)] * (p.ndim - 1) + [(0, pad_c)]) if pad_c else p

    gn_gamma = params["gn_gamma"].astype(jnp.float32)         # (4, C)
    gn_beta = params["gn_beta"].astype(jnp.float32)           # (4, C)
    conv_b = pad_last(params["conv_b"].astype(jnp.float32))   # (4, Cp)
    conv_w = params["conv_w"].astype(jnp.float32)             # (4, 3, C, C)  [in, out]
    if pad_c:
        conv_w = jnp.pad(conv_w, ((0, 0), (0, 0), (0, pad_c), (0, pad_c)))
    conv_w = conv_w.astype(jnp.bfloat16)                      # (4, 3, Cp, Cp)
    tweight = params["temporal_weight"].astype(jnp.float32).reshape(1, 1)

    src = xpad
    final = None
    for layer in range(4):                                    # conv1 .. conv4
        scale, shift = _fold_gn_affine(s, s2, count, gn_gamma[layer], gn_beta[layer], c, cp)
        is_last = layer == 3
        out = _run_layer(
            src, scale, shift, conv_w[layer], conv_b[layer].reshape(1, cp),
            tr=tr, k_shift=k_shift, n_tiles=n_tiles, is_last=is_last,
            identity=xpad if is_last else None, tweight=tweight,
            phys_vmem=phys_vmem, out_dtype=in_dtype if is_last else jnp.float32)
        if is_last:
            final = out
        else:
            src, psum = out
            ps = jnp.sum(psum, axis=1)                        # (B, 2, Cp)
            s, s2 = ps[:, 0, :c], ps[:, 1, :c]

    # (B, T*H*W, Cp) -> drop channel padding -> '(b t) c h w'
    out = final[:, :, :c].reshape(b, t, hw, c).transpose(0, 1, 3, 2).reshape(bt, c, hh, ww)
    return out.astype(in_dtype)


def reference_forward(hidden_states, num_frames, params):
    """Pure-JAX f32 reference mirroring the PyTorch forward (b c t h w layout)."""
    bt, c, h, w = hidden_states.shape
    b = bt // num_frames
    t = num_frames
    x = hidden_states.astype(jnp.float32).reshape(b, t, c, h, w).transpose(0, 2, 1, 3, 4)
    identity = x

    def group_norm(v, gamma, beta):
        bb, cc, tt, hh, ww = v.shape
        g = v.reshape(bb, NUM_GROUPS, cc // NUM_GROUPS, tt, hh, ww)
        mean = g.mean(axis=(2, 3, 4, 5), keepdims=True)
        var = g.var(axis=(2, 3, 4, 5), keepdims=True)
        g = (g - mean) / jnp.sqrt(var + GN_EPS)
        v = g.reshape(bb, cc, tt, hh, ww)
        return v * gamma[None, :, None, None, None] + beta[None, :, None, None, None]

    def conv3d_t(v, wk, bias):
        vp = jnp.pad(v, ((0, 0), (0, 0), (1, 1), (0, 0), (0, 0)))
        out = 0.0
        for k in range(3):
            out = out + jnp.einsum("bcthw,cd->bdthw", vp[:, :, k:k + t], wk[k])
        return out + bias[None, :, None, None, None]

    hcur = x
    for i in range(4):
        n = group_norm(hcur, params["gn_gamma"][i], params["gn_beta"][i])
        n = n * jax.nn.sigmoid(n)
        hcur = conv3d_t(n, params["conv_w"][i], params["conv_b"][i])

    out = identity + jnp.abs(params["temporal_weight"][0, 0]) * hcur
    out = out.transpose(0, 2, 1, 3, 4).reshape(bt, c, h, w)
    return out.astype(hidden_states.dtype)


if __name__ == "__main__":
    # Small shapes consistent with the module: GroupNorm(32, C) needs C % 32 == 0.
    B, T, C, H, W = 2, 4, 32, 8, 8
    key = jax.random.PRNGKey(0)
    k = jax.random.split(key, 8)

    # Non-zero mean input so the E[x^2]-E[x]^2 GroupNorm path is exercised off N(0,1).
    hidden = 0.9 * jax.random.normal(k[0], (B * T, C, H, W), jnp.float32) + 0.5

    # Parameter shapes follow __init__ (4x [GroupNorm affine + Conv3d(C,C,(3,1,1))]).
    # NOTE: the module zero-inits conv4 and sets temporal_weight=1e-5; here we use
    # deterministic non-trivial values so the whole compute path is exercised.
    # Conv weights are snapped to the bf16 grid so the kernel's bf16 weight cast is
    # exact; the only kernel/reference divergence is the intentional bf16 activation
    # rounding on the MXU path (covered by the tolerance below).
    conv_w = jax.random.normal(k[3], (4, 3, C, C), jnp.float32) / np.sqrt(3 * C)
    conv_w = conv_w.astype(jnp.bfloat16).astype(jnp.float32)
    params = {
        "gn_gamma": 1.0 + 0.1 * jax.random.normal(k[1], (4, C), jnp.float32),
        "gn_beta": 0.1 * jax.random.normal(k[2], (4, C), jnp.float32),
        "conv_w": conv_w,
        "conv_b": 0.1 * jax.random.normal(k[4], (4, C), jnp.float32),
        "temporal_weight": jnp.full((1, 1), 0.7, jnp.float32),
    }

    out = jax.block_until_ready(temporal_conv_layer(hidden, T, params))
    ref = jax.block_until_ready(reference_forward(hidden, T, params))
    np.testing.assert_allclose(np.asarray(out), np.asarray(ref), rtol=2e-2, atol=2e-2)
    print("KERNEL_OK")
</pallas_src>

<mosaic_0001>
module attributes {stable_mosaic.version = 11 : i64} {
  func.func @_gn_silu_tconv_kernel(%arg0: i32, %arg1: i32, %arg2: memref<1x1x128xf32, #tpu.memory_space<vmem>>, %arg3: memref<1x1x128xf32, #tpu.memory_space<vmem>>, %arg4: memref<3x128x128xbf16, #tpu.memory_space<vmem>>, %arg5: memref<1x128xf32, #tpu.memory_space<vmem>>, %arg6: memref<1x64x128xf32, #tpu.memory_space<vmem>>, %arg7: memref<1x64x128xf32, #tpu.memory_space<vmem>>, %arg8: memref<1x64x128xf32, #tpu.memory_space<vmem>>, %arg9: memref<1x64x128xf32, #tpu.memory_space<vmem>>, %arg10: memref<1x1x2x128xf32, #tpu.memory_space<vmem>>) attributes {dimension_semantics = [#tpu.dimension_semantics<parallel>, #tpu.dimension_semantics<parallel>], iteration_bounds = array<i64: 2, 4>, scalar_prefetch = 0 : i64, scratch_operands = 0 : i64, tpu.core_type = #tpu.core_type<tc>, window_params = [{transform_indices = @transform_0, window_bounds = array<i64: 1, 1, 128>}, {transform_indices = @transform_1, window_bounds = array<i64: 1, 1, 128>}, {pipeline_mode = #tpu.pipeline_mode<synchronous>, transform_indices = @transform_2, window_bounds = array<i64: 3, 128, 128>}, {pipeline_mode = #tpu.pipeline_mode<synchronous>, transform_indices = @transform_3, window_bounds = array<i64: 1, 128>}, {transform_indices = @transform_4, window_bounds = array<i64: 1, 64, 128>}, {transform_indices = @transform_5, window_bounds = array<i64: 1, 64, 128>}, {transform_indices = @transform_6, window_bounds = array<i64: 1, 64, 128>}, {transform_indices = @transform_7, window_bounds = array<i64: 1, 64, 128>}, {transform_indices = @transform_8, window_bounds = array<i64: 1, 1, 2, 128>}]} {
    %c0 = arith.constant 0 : index
    %c0_0 = arith.constant 0 : index
    %c0_1 = arith.constant 0 : index
    %0 = vector.load %arg2[%c0, %c0_0, %c0_1] : memref<1x1x128xf32, #tpu.memory_space<vmem>>, vector<1x1x128xf32>
    %1 = vector.shape_cast %0 : vector<1x1x128xf32> to vector<1x128xf32>
    %c0_2 = arith.constant 0 : index
    %c0_3 = arith.constant 0 : index
    %c0_4 = arith.constant 0 : index
    %2 = vector.load %arg3[%c0_2, %c0_3, %c0_4] : memref<1x1x128xf32, #tpu.memory_space<vmem>>, vector<1x1x128xf32>
    %3 = vector.shape_cast %2 : vector<1x1x128xf32> to vector<1x128xf32>
    %c1_i32 = arith.constant 1 : i32
    %4 = arith.cmpi sge, %arg1, %c1_i32 : i32
    %cst = arith.constant 1.000000e+00 : f32
    %cst_5 = arith.constant 0.000000e+00 : f32
    %5 = arith.select %4, %cst, %cst_5 : f32
    %c3_i32 = arith.constant 3 : i32
    %6 = arith.cmpi slt, %arg1, %c3_i32 : i32
    %cst_6 = arith.constant 1.000000e+00 : f32
    %cst_7 = arith.constant 0.000000e+00 : f32
    %7 = arith.select %6, %cst_6, %cst_7 : f32
    %c0_8 = arith.constant 0 : index
    %c0_9 = arith.constant 0 : index
    %c0_10 = arith.constant 0 : index
    %8 = vector.load %arg6[%c0_8, %c0_9, %c0_10] : memref<1x64x128xf32, #tpu.memory_space<vmem>>, vector<1x64x128xf32>
    %9 = vector.shape_cast %8 : vector<1x64x128xf32> to vector<64x128xf32>
    %cst_11 = arith.constant 1.000000e+00 : f32
    %10 = vector.broadcast %cst_11 : f32 to vector<1x128xf32>
    %11 = arith.mulf %1, %10 : vector<1x128xf32>
    %12 = vector.broadcast %11 : vector<1x128xf32> to vector<64x128xf32>
    %13 = arith.mulf %9, %12 : vector<64x128xf32>
    %cst_12 = arith.constant 1.000000e+00 : f32
    %14 = vector.broadcast %cst_12 : f32 to vector<1x128xf32>
    %15 = arith.mulf %3, %14 : vector<1x128xf32>
    %16 = vector.broadcast %15 : vector<1x128xf32> to vector<64x128xf32>
    %17 = arith.addf %13, %16 : vector<64x128xf32>
    %18 = arith.negf %17 : vector<64x128xf32>
    %19 = math.exp %18 : vector<64x128xf32>
    %cst_13 = arith.constant 1.000000e+00 : f32
    %20 = vector.broadcast %cst_13 : f32 to vector<64x128xf32>
    %21 = arith.addf %20, %19 : vector<64x128xf32>
    %22 = arith.divf %20, %21 : vector<64x128xf32>
    %23 = arith.mulf %17, %22 : vector<64x128xf32>
    %24 = arith.truncf %23 : vector<64x128xf32> to vector<64x128xbf16>
    %c1 = arith.constant 1 : index
    %c0_14 = arith.constant 0 : index
    %c0_15 = arith.constant 0 : index
    %25 = vector.load %arg4[%c1, %c0_14, %c0_15] : memref<3x128x128xbf16, #tpu.memory_space<vmem>>, vector<1x128x128xbf16>
    %26 = vector.shape_cast %25 : vector<1x128x128xbf16> to vector<128x128xbf16>
    %cst_16 = arith.constant dense<0.000000e+00> : vector<64x128xf32>
    %27 = tpu.matmul %24, %26, %cst_16 {dimension_numbers = #tpu.dot_dimension_numbers<[1], [0], [0], [1], [0, 0, 1, 1], [], []>} : vector<64x128xbf16>, vector<128x128xbf16>, vector<64x128xf32> -> vector<64x128xf32>
    %c0_17 = arith.constant 0 : index
    %c0_18 = arith.constant 0 : index
    %c0_19 = arith.constant 0 : index
    %28 = vector.load %arg7[%c0_17, %c0_18, %c0_19] : memref<1x64x128xf32, #tpu.memory_space<vmem>>, vector<1x64x128xf32>
    %29 = vector.shape_cast %28 : vector<1x64x128xf32> to vector<64x128xf32>
    %30 = vector.broadcast %5 : f32 to vector<1x128xf32>
    %31 = arith.mulf %1, %30 : vector<1x128xf32>
    %32 = vector.broadcast %31 : vector<1x128xf32> to vector<64x128xf32>
    %33 = arith.mulf %29, %32 : vector<64x128xf32>
    %34 = vector.broadcast %5 : f32 to vector<1x128xf32>
    %35 = arith.mulf %3, %34 : vector<1x128xf32>
    %36 = vector.broadcast %35 : vector<1x128xf32> to vector<64x128xf32>
    %37 = arith.addf %33, %36 : vector<64x128xf32>
    %38 = arith.negf %37 : vector<64x128xf32>
    %39 = math.exp %38 : vector<64x128xf32>
    %cst_20 = arith.constant 1.000000e+00 : f32
    %40 = vector.broadcast %cst_20 : f32 to vector<64x128xf32>
    %41 = arith.addf %40, %39 : vector<64x128xf32>
    %42 = arith.divf %40, %41 : vector<64x128xf32>
    %43 = arith.mulf %37, %42 : vector<64x128xf32>
    %44 = arith.truncf %43 : vector<64x128xf32> to vector<64x128xbf16>
    %c0_21 = arith.constant 0 : index
    %c0_22 = arith.constant 0 : index
    %c0_23 = arith.constant 0 : index
    %45 = vector.load %arg4[%c0_21, %c0_22, %c0_23] : memref<3x128x128xbf16, #tpu.memory_space<vmem>>, vector<1x128x128xbf16>
    %46 = vector.shape_cast %45 : vector<1x128x128xbf16> to vector<128x128xbf16>
    %cst_24 = arith.constant dense<0.000000e+00> : vector<64x128xf32>
    %47 = tpu.matmul %44, %46, %cst_24 {dimension_numbers = #tpu.dot_dimension_numbers<[1], [0], [0], [1], [0, 0, 1, 1], [], []>} : vector<64x128xbf16>, vector<128x128xbf16>, vector<64x128xf32> -> vector<64x128xf32>
    %48 = arith.addf %27, %47 : vector<64x128xf32>
    %c0_25 = arith.constant 0 : index
    %c0_26 = arith.constant 0 : index
    %c0_27 = arith.constant 0 : index
    %49 = vector.load %arg8[%c0_25, %c0_26, %c0_27] : memref<1x64x128xf32, #tpu.memory_space<vmem>>, vector<1x64x128xf32>
    %50 = vector.shape_cast %49 : vector<1x64x128xf32> to vector<64x128xf32>
    %51 = vector.broadcast %7 : f32 to vector<1x128xf32>
    %52 = arith.mulf %1, %51 : vector<1x128xf32>
    %53 = vector.broadcast %52 : vector<1x128xf32> to vector<64x128xf32>
    %54 = arith.mulf %50, %53 : vector<64x128xf32>
    %55 = vector.broadcast %7 : f32 to vector<1x128xf32>
    %56 = arith.mulf %3, %55 : vector<1x128xf32>
    %57 = vector.broadcast %56 : vector<1x128xf32> to vector<64x128xf32>
    %58 = arith.addf %54, %57 : vector<64x128xf32>
    %59 = arith.negf %58 : vector<64x128xf32>
    %60 = math.exp %59 : vector<64x128xf32>
    %cst_28 = arith.constant 1.000000e+00 : f32
    %61 = vector.broadcast %cst_28 : f32 to vector<64x128xf32>
    %62 = arith.addf %61, %60 : vector<64x128xf32>
    %63 = arith.divf %61, %62 : vector<64x128xf32>
    %64 = arith.mulf %58, %63 : vector<64x128xf32>
    %65 = arith.truncf %64 : vector<64x128xf32> to vector<64x128xbf16>
    %c2 = arith.constant 2 : index
    %c0_29 = arith.constant 0 : index
    %c0_30 = arith.constant 0 : index
    %66 = vector.load %arg4[%c2, %c0_29, %c0_30] : memref<3x128x128xbf16, #tpu.memory_space<vmem>>, vector<1x128x128xbf16>
    %67 = vector.shape_cast %66 : vector<1x128x128xbf16> to vector<128x128xbf16>
    %cst_31 = arith.constant dense<0.000000e+00> : vector<64x128xf32>
    %68 = tpu.matmul %65, %67, %cst_31 {dimension_numbers = #tpu.dot_dimension_numbers<[1], [0], [0], [1], [0, 0, 1, 1], [], []>} : vector<64x128xbf16>, vector<128x128xbf16>, vector<64x128xf32> -> vector<64x128xf32>
    %69 = arith.addf %48, %68 : vector<64x128xf32>
    %c0_32 = arith.constant 0 : index
    %c0_33 = arith.constant 0 : index
    %70 = vector.load %arg5[%c0_32, %c0_33] : memref<1x128xf32, #tpu.memory_space<vmem>>, vector<1x128xf32>
    %71 = vector.broadcast %70 : vector<1x128xf32> to vector<64x128xf32>
    %72 = arith.addf %69, %71 : vector<64x128xf32>
    %c0_34 = arith.constant 0 : index
    %c0_35 = arith.constant 0 : index
    %c0_36 = arith.constant 0 : index
    %73 = vector.load %arg9[%c0_34, %c0_35, %c0_36] : memref<1x64x128xf32, #tpu.memory_space<vmem>>, vector<1x64x128xf32>
    %74 = vector.shape_cast %73 : vector<1x64x128xf32> to vector<64x128xf32>
    %75 = vector.shape_cast %72 : vector<64x128xf32> to vector<1x64x128xf32>
    tpu.vector_store %arg9[%c0_34, %c0_35, %c0_36], %75 {strides = array<i32>} : memref<1x64x128xf32, #tpu.memory_space<vmem>>, vector<1x64x128xf32>,
    %cst_37 = arith.constant dense<0.000000e+00> : vector<128xf32>
    %76 = vector.multi_reduction <add>, %72, %cst_37 [0] : vector<64x128xf32> to vector<128xf32>
    %77 = vector.shape_cast %76 : vector<128xf32> to vector<1x128xf32>
    %78 = arith.mulf %72, %72 : vector<64x128xf32>
    %cst_38 = arith.constant dense<0.000000e+00> : vector<128xf32>
    %79 = vector.multi_reduction <add>, %78, %cst_38 [0] : vector<64x128xf32> to vector<128xf32>
    %80 = vector.shape_cast %79 : vector<128xf32> to vector<1x128xf32>
    %81 = tpu.concatenate %77, %80 in 0 : vector<1x128xf32>, vector<1x128xf32> -> vector<2x128xf32>
    %c0_39 = arith.constant 0 : index
    %c0_40 = arith.constant 0 : index
    %c0_41 = arith.constant 0 : index
    %c0_42 = arith.constant 0 : index
    %82 = vector.load %arg10[%c0_39, %c0_40, %c0_41, %c0_42] : memref<1x1x2x128xf32, #tpu.memory_space<vmem>>, vector<1x1x2x128xf32>
    %83 = vector.shape_cast %82 : vector<1x1x2x128xf32> to vector<2x128xf32>
    %84 = vector.shape_cast %81 : vector<2x128xf32> to vector<1x1x2x128xf32>
    tpu.vector_store %arg10[%c0_39, %c0_40, %c0_41, %c0_42], %84 {strides = array<i32>} : memref<1x1x2x128xf32, #tpu.memory_space<vmem>>, vector<1x1x2x128xf32>,
    return
  }
  func.func @transform_0(%arg0: i32, %arg1: i32) -> (i32, i32, i32) {
    %c0_i32 = arith.constant 0 : i32
    %c0_i32_0 = arith.constant 0 : i32
    %c0_i32_1 = arith.constant 0 : i32
    return %arg0, %c0_i32, %c0_i32_0 : i32, i32, i32
  }
  func.func @transform_1(%arg0: i32, %arg1: i32) -> (i32, i32, i32) {
    %c0_i32 = arith.constant 0 : i32
    %c0_i32_0 = arith.constant 0 : i32
    %c0_i32_1 = arith.constant 0 : i32
    return %arg0, %c0_i32, %c0_i32_0 : i32, i32, i32
  }
  func.func @transform_2(%arg0: i32, %arg1: i32) -> (i32, i32, i32) {
    %c0_i32 = arith.constant 0 : i32
    %c0_i32_0 = arith.constant 0 : i32
    %c0_i32_1 = arith.constant 0 : i32
    %c0_i32_2 = arith.constant 0 : i32
    return %c0_i32, %c0_i32_0, %c0_i32_1 : i32, i32, i32
  }
  func.func @transform_3(%arg0: i32, %arg1: i32) -> (i32, i32) {
    %c0_i32 = arith.constant 0 : i32
    %c0_i32_0 = arith.constant 0 : i32
    %c0_i32_1 = arith.constant 0 : i32
    return %c0_i32, %c0_i32_0 : i32, i32
  }
  func.func @transform_4(%arg0: i32, %arg1: i32) -> (i32, i32, i32) {
    %c0_i32 = arith.constant 0 : i32
    %c0_i32_0 = arith.constant 0 : i32
    return %arg0, %arg1, %c0_i32 : i32, i32, i32
  }
  func.func @transform_5(%arg0: i32, %arg1: i32) -> (i32, i32, i32) {
    %c1_i32 = arith.constant 1 : i32
    %0 = arith.subi %arg1, %c1_i32 : i32
    %c0_i32 = arith.constant 0 : i32
    %1 = arith.maxsi %0, %c0_i32 : i32
    %c0_i32_0 = arith.constant 0 : i32
    %c0_i32_1 = arith.constant 0 : i32
    return %arg0, %1, %c0_i32_0 : i32, i32, i32
  }
  func.func @transform_6(%arg0: i32, %arg1: i32) -> (i32, i32, i32) {
    %c1_i32 = arith.constant 1 : i32
    %0 = arith.addi %arg1, %c1_i32 : i32
    %c3_i32 = arith.constant 3 : i32
    %1 = arith.minsi %0, %c3_i32 : i32
    %c0_i32 = arith.constant 0 : i32
    %c0_i32_0 = arith.constant 0 : i32
    return %arg0, %1, %c0_i32 : i32, i32, i32
  }
  func.func @transform_7(%arg0: i32, %arg1: i32) -> (i32, i32, i32) {
    %c0_i32 = arith.constant 0 : i32
    %c0_i32_0 = arith.constant 0 : i32
    return %arg0, %arg1, %c0_i32 : i32, i32, i32
  }
  func.func @transform_8(%arg0: i32, %arg1: i32) -> (i32, i32, i32, i32) {
    %c0_i32 = arith.constant 0 : i32
    %c0_i32_0 = arith.constant 0 : i32
    %c0_i32_1 = arith.constant 0 : i32
    return %arg0, %arg1, %c0_i32, %c0_i32_0 : i32, i32, i32, i32
  }
}

</mosaic_0001>

<bundles_post_ra>
// kernel: tpu_custom_call.1
= control target key start
LH: loop header
LB: loop body
LE: loop exit
PB: predicated region body
PF: predicated region fallthrough
CT: control target
= control target key end

     0   :  { %s3315_s0 = inlined_call_operand.hbm [shape: f32[2,1,128], index: 0, kind: input, shape index: {}]   ;;  %s3316_s1 = inlined_call_operand.vmem [shape: f32[2,1,128], index: 1, kind: input, shape index: {}]   ;;  %s3317_s2 = inlined_call_operand.hbm [shape: bf16[3,128,128], index: 2, kind: input, shape index: {}]   ;;  %s3318_s3 = inlined_call_operand.vmem [shape: f32[1,128], index: 3, kind: input, shape index: {}]   ;;  %s3319_s4 = inlined_call_operand.hbm [shape: f32[2,256,128], index: 4, kind: input, shape index: {}]   ;;  %s3320_s5 = inlined_call_operand.hbm [shape: f32[2,256,128], index: 5, kind: input, shape index: {}]   ;;  %s3321_s6 = inlined_call_operand.hbm [shape: f32[2,256,128], index: 6, kind: input, shape index: {}]   ;;  %s3322_s7 = inlined_call_operand.hbm [shape: f32[2,256,128], index: 7, kind: output, shape index: {0}]   ;;  %s3323_s8 = inlined_call_operand.hbm [shape: f32[2,4,2,128], index: 8, kind: output, shape index: {1}]  }
   0x1   :  { %3355 = sst [smem:[#allocation38_spill]] %s3315_s0 }
   0x2   :  { %3356 = sst [smem:[#allocation39_spill]] %s3316_s1 }
   0x3   :  { %3357 = sst [smem:[#allocation40_spill]] %s3317_s2 }
   0x4   :  { %3358 = sst [smem:[#allocation41_spill]] %s3318_s3 }
   0x5   :  { %3359 = sst [smem:[#allocation42_spill]] %s3319_s4 }
   0x6   :  { %3360 = sst [smem:[#allocation43_spill]] %s3320_s5 }
   0x7   :  { %3361 = sst [smem:[#allocation44_spill]] %s3321_s6 }
   0x8   :  { %3362 = sst [smem:[#allocation45_spill]] %s3322_s7 }
   0x9   :  { %3363 = sst [smem:[#allocation46_spill]] %s3323_s8 }
   0xa   :  { %14 = vsyncpa [#allocation3], 0 }
   0xb   :  { %16 = vsyncpa [#allocation3 + $0x1], 0 }
   0xc   :  { %17 = vsyncpa [#allocation6], 0 }
   0xd   :  { %18 = vsyncpa [#allocation4], 0 }
   0xe   :  { %20 = vsyncpa [#allocation4 + $0x1], 0 }
   0xf   :  { %21 = vsyncpa [#allocation12], 0 }
  0x10   :  { %23 = vsyncpa [#allocation12 + $0x1], 0  ;;  %s2484_s27 = smov 0   ;;  %s2486_s28 = smov 0  }
  0x11   :  { %s2488_s29 = smov 0   ;;  %s2490_s30 = smov 0  }
  0x12   :  { %s2492_s9 = smov 0   ;;  %s2494_s10 = smov 0  }
  0x13   :  { %s2496_s11 = smov 0   ;;  %s2498_s12 = smov 0  }
  0x14   :  { %s2500_s13 = smov 0   ;;  %s2502_s14 = smov 0  }
  0x15   :  { %s2504_s15 = smov 0   ;;  %s2506_s16 = smov 0  }
  0x16   :  { %s2508_s17 = smov 0   ;;  %s2510_s18 = smov 0  }
  0x17   :  { %s2512_s19 = smov 0   ;;  %s2514_s20 = smov 0  }
  0x18   :  { %s2516_s21 = smov 0  }
  0x19 LB: > { %3364 = sst [smem:[#allocation20_spill]] %s2360_s27  ;;  %s2568_s22 = sadd.s32 4294967295, %s2424_s21   ;;  %s2424_s21 = sphi %s2516_s21, %s29_s21   ;;  %s2420_s20 = sphi %s2514_s20, %s3452_s20   ;;  %s2416_s19 = sphi %s2512_s19, %s3451_s19   ;;  %s2412_s18 = sphi %s2510_s18, %s3450_s18   ;;  %s2408_s17 = sphi %s2508_s17, %s3449_s17   ;;  %s2404_s16 = sphi %s2506_s16, %s3448_s16   ;;  %s2400_s15 = sphi %s2504_s15, %s3458_s15   ;;  %s2396_s14 = sphi %s2502_s14, %s3446_s14   ;;  %s2392_s13 = sphi %s2500_s13, %s3445_s13   ;;  %s2388_s12 = sphi %s2498_s12, %s3457_s12   ;;  %s2384_s11 = sphi %s2496_s11, %s3456_s11   ;;  %s2380_s10 = sphi %s2494_s10, %s3443_s10   ;;  %s2376_s9 = sphi %s2492_s9, %s3455_s9   ;;  %s2372_s30 = sphi %s2490_s30, %s3454_s30   ;;  %s2368_s29 = sphi %s2488_s29, %s3453_s29   ;;  %s2364_s28 = sphi %s2486_s28, %s3441_s28   ;;  %s2360_s27 = sphi %s2484_s27, %s3440_s27  }
  0x1a   : > { %3365 = sst [smem:[#allocation21_spill]] %s2364_s28  ;;  %s2571_s23 = sadd.s32 1, %s2416_s19 }
  0x1b   : > { %3366 = sst [smem:[#allocation22_spill]] %s2368_s29  ;;  %p39_p0 = scmp.ge.s32.totalorder %s2571_s23, 4 }
  0x1c   : > { %3367 = sst [smem:[#allocation23_spill]] %s2380_s10  ;;  %s41_s24 = sadd.s32 1, %s2420_s20 }
  0x1d   : > { %3368 = sst [smem:[#allocation24_spill]] %s2384_s11  ;;  %s48_s25 = sadd.s32 1, %s2404_s16 }
  0x1e   : > { %3369 = sst [smem:[#allocation25_spill]] %s2392_s13  ;;  %p55_p1 = scmp.ne.s32.totalorder %s2404_s16, %s2400_s15 }
  0x1f   : > { %3370 = sst [smem:[#allocation26_spill]] %s2400_s15  ;;  %s3460_s24 = smov (!%p39_p0, %s41_s24), %s2420_s20 }
  0x20   : > { %3371 = sst [smem:[#allocation27_spill]] %s2404_s16  ;;  %p3336_p2 = scmp.eq.s32.totalorder %s2424_s21, 0 }
  0x21   : > { %3372 = sst [smem:[#allocation28_spill]] %s2408_s17  ;;  %p61_p3 = scmp.ne.s32.totalorder %s2400_s15, %s2396_s14 }
  0x22   : > { %3373 = sst [smem:[#allocation29_spill]] %s2412_s18  ;;  %p43_p4 = scmp.ge.s32.totalorder %s3460_s24, 2 }
  0x23   : > { %3374 = sst [smem:[#allocation30_spill]] %s2416_s19  ;;  %p3335_p5 = scmp.eq.s32.totalorder %s2568_s22, 0 }
  0x24   : > { %3375 = sst [smem:[#allocation31_spill]] %s2420_s20  ;;  %p2587_p6 = por %p3336_p2, %p55_p1 }
  0x25   : > { %s2579_s26 = scalar_select %p39_p0, 0, %s2571_s23  }
  0x26   : > { %s3462_s24 = smov (%p43_p4, %s3460_s24), 0  ;;  %p2597_p7 = por %p3335_p5, %p61_p3 }
  0x27   : > { %3376 = sst [smem:[#allocation32_spill]] %s2579_s26  ;;  %s140_s7 = ssub.s32 %s2416_s19, %s2579_s26 }
  0x28   : > { %3378 = sst [smem:[#allocation33_spill]] %s3462_s24  ;;  %s2603_s1 = ssub.s32 %s2420_s20, %s3462_s24 }
  0x29   : > { %s3379_s3 = scalar_select %p2597_p7, 1, 0 }
  0x2a   : > { %p46_p8 = scmp.eq.s32.totalorder %s2603_s1, 0  ;;  %s2607_s14 = sor.u32 %s140_s7, %s2603_s1 }
  0x2b   : > { %p3334_p10 = scmp.lt.s32.totalorder %s2424_s21, 8  ;;  %s321_s18 = sand.u32 1, %s2424_s21  }
  0x2c   : > { %s2612_s17 = scalar_select %p46_p8, %s2404_s16, %s48_s25  }
  0x2d   : > { %s323_s15 = sand.u32 1, %s2404_s16   ;;  %s1532_s6 = sshll.u32 %s2420_s20, 4 }
  0x2e   : > { %3380 = sst [smem:[#allocation34_spill]] %s2612_s17  ;;  %s324_s27 = scalar_lea.vmem [#allocation2], %s323_s15 }
  0x2f   : > { %s331_s28 = sshll.u32 %s324_s27, 4  ;;  %s3381_s0 = sld [smem:[#allocation38_spill]]  ;;  %s2622_s28 = int_to_ptr.vmem [resolvable:$true] %s331_s28 }
  0x30   : > { %p2628_p11 = pnand %p3334_p10, %p2587_p6  ;;  %s2632_s27 = scalar_lea.sflag [#allocation3], %s321_s18 }
  0x32   : > { %p2060_p13 = pneg %p2628_p11 }
  0x35   : > { %s2620_s24 = scalar_lea.hbm %s3381_s0, %s1532_s6  ;;  %s2063_s8 = scalar_lea.hbm %s3381_s0, 32 }
  0x36   : > { %s2058_s15 = scalar_lea.hbm %s2620_s24, 16  ;;  %p2064_p3 = scmp.lt.u32.totalorder %s2620_s24, %s3381_s0 }
  0x37   : > { %p2059_p12 = scmp.ne.s32.totalorder %s2620_s24, %s2058_s15  ;;  %p2065_p4 = scmp.lt.u32.totalorder %s2063_s8, %s2058_s15 }
  0x38   : > { %p2067_p8 = scmp.lt.u32.totalorder %s2058_s15, %s2620_s24 }
  0x39   : > { %p2061_p0 = pnand %p2060_p13, %p2059_p12  ;;  %p2066_p6 = por %p2065_p4, %p2064_p3 }
  0x3b   : > { %p2062_p1 = pneg %p2061_p0  ;;  %p2068_p10 = por %p2067_p8, %p2066_p6 }
  0x3d   : > { %p2069_p5 = pnand %p2068_p10, %p2062_p1 }
  0x3f   : > { %2072 = shalt.err (!%p2069_p5)
}
  0x40   : > { %s2073_s18 = scalar_lea.vmem %s2622_s28, 16  ;;  %s2426_s2 = smov [#allocation2]  }
  0x41   : > { %p2074_p12 = scmp.ne.s32.totalorder %s2622_s28, %s2073_s18  ;;  %s2078_s6 = sshll.u32 %s2426_s2, 4  ;;  %s2079_s6 = int_to_ptr.vmem [resolvable:$false] %s2078_s6 }
  0x42   : > { %s2080_s29 = scalar_lea.vmem %s2079_s6, 32  ;;  %p2081_p9 = scmp.lt.s32.totalorder %s2622_s28, %s2079_s6 }
  0x43   : > { %p2076_p0 = pnand %p2074_p12, %p2060_p13  ;;  %p2082_p3 = scmp.lt.s32.totalorder %s2080_s29, %s2073_s18 }
  0x45   : > { %p2077_p2 = pneg %p2076_p0  ;;  %p2083_p4 = por %p2082_p3, %p2081_p9 }
  0x47   : > { %p2084_p6 = pnand %p2083_p4, %p2077_p2 }
  0x49   : > { %2087 = shalt.err (!%p2084_p6)
}
  0x4a   : > { %1774 = dma.hbm_to_vmem [thread:$0]  (!%p2628_p11), %s2620_s24, 16, %s2622_s28, %s2632_s27  }
  0x4b   : > { %s1526_s15 = sadd.s32 4294967294, %s2424_s21   ;;  %s144_s7 = sadd.s32 1, %s2392_s13 }
  0x4c   : > { %p3383_p2 = scmp.eq.s32.totalorder %s2607_s14, 0  ;;  %p151_p5 = scmp.ne.s32.totalorder %s2392_s13, %s2388_s12 }
  0x4d   : > { %p157_p9 = scmp.ne.s32.totalorder %s2388_s12, %s2384_s11  ;;  %p251_p10 = scmp.eq.s32.totalorder %s2568_s22, 7 }
  0x4e   : > { %s2665_s8 = scalar_select %p3383_p2, %s2392_s13, %s144_s7  }
  0x4f   : > { %p257_p13 = scmp.eq.s32.totalorder %s1526_s15, 7  ;;  %p3385_p1 = scmp.eq.s32.totalorder %s2424_s21, 0 }
  0x50   : > { %3384 = sst [smem:[#allocation35_spill]] %s2665_s8  ;;  %p3387_p12 = scmp.eq.s32.totalorder %s2568_s22, 0 }
  0x51   : > { %p2674_p8 = por %p151_p5, %p3385_p1  ;;  %p2684_p11 = por %p251_p10, %p151_p5 }
  0x52   : > { %p2680_p0 = por %p157_p9, %p3387_p12  ;;  %p2688_p3 = por %p257_p13, %p157_p9 }
  0x53   : > { %s3389_s28 = scalar_select %p2684_p11, 1, 0 }
  0x54   : > { %s3388_s18 = scalar_select %p2680_p0, 1, 0 }
  0x55   : > { %s3390_s24 = scalar_select %p2688_p3, 1, 0 }
  0x56   : > { %s346_s14 = sand.u32 1, %s2392_s13   ;;  %s1534_s2 = sshll.u32 %s2416_s19, 3 }
  0x57   : > { %3391 = sst [smem:[#allocation36_spill]] %s3390_s24  ;;  %s1533_s6 = sshll.u32 %s346_s14, 6 }
  0x58   : > { %s2695_s29 = sshll.u32 %s2420_s20, 5  ;;  %s348_s0 = scalar_lea.vmem [#allocation7], %s1533_s6 }
  0x59   : > { %s354_s15 = sadd.s32 %s2695_s29, %s1534_s2  ;;  %s357_s17 = sshll.u32 %s348_s0, 4  ;;  %s2703_s17 = int_to_ptr.vmem [resolvable:$true] %s357_s17 }
  0x5a   : > { %s1536_s7 = sshll.u32 %s354_s15, 7  ;;  %s3392_s4 = sld [smem:[#allocation42_spill]] }
  0x5b   : > { %p3393_p4 = scmp.lt.s32.totalorder %s2424_s21, 8 }
  0x5d   : > { %p2709_p6 = pnand %p3393_p4, %p2674_p8 }
  0x5f   : > { %p2090_p5 = pneg %p2709_p6 }
  0x60   : > { %s2701_s11 = scalar_lea.hbm %s3392_s4, %s1536_s7  ;;  %s2093_s2 = scalar_lea.hbm %s3392_s4, 8192 }
  0x61   : > { %s2088_s0 = scalar_lea.hbm %s2701_s11, 1024  ;;  %p2094_p13 = scmp.lt.u32.totalorder %s2701_s11, %s3392_s4 }
  0x62   : > { %p2089_p2 = scmp.ne.s32.totalorder %s2701_s11, %s2088_s0  ;;  %p2095_p1 = scmp.lt.u32.totalorder %s2093_s2, %s2088_s0 }
  0x63   : > { %p2097_p12 = scmp.lt.u32.totalorder %s2088_s0, %s2701_s11 }
  0x64   : > { %p2091_p9 = pnand %p2090_p5, %p2089_p2  ;;  %p2096_p8 = por %p2095_p1, %p2094_p13 }
  0x66   : > { %p2092_p10 = pneg %p2091_p9  ;;  %p2098_p4 = por %p2097_p12, %p2096_p8 }
  0x68   : > { %p2099_p3 = pnand %p2098_p4, %p2092_p10 }
  0x6a   : > { %2102 = shalt.err (!%p2099_p3)
}
  0x6b   : > { %s2103_s15 = scalar_lea.vmem %s2703_s17, 1024  ;;  %s2427_s7 = smov [#allocation7]  }
  0x6c   : > { %p2104_p2 = scmp.ne.s32.totalorder %s2703_s17, %s2103_s15  ;;  %s2108_s16 = sshll.u32 %s2427_s7, 4  ;;  %s2109_s16 = int_to_ptr.vmem [resolvable:$false] %s2108_s16 }
  0x6d   : > { %s2110_s8 = scalar_lea.vmem %s2109_s16, 2048  ;;  %p2111_p0 = scmp.lt.s32.totalorder %s2703_s17, %s2109_s16 }
  0x6e   : > { %p2106_p9 = pnand %p2104_p2, %p2090_p5  ;;  %p2112_p13 = scmp.lt.s32.totalorder %s2110_s8, %s2103_s15 }
  0x70   : > { %p2107_p11 = pneg %p2106_p9  ;;  %p2113_p1 = por %p2112_p13, %p2111_p0 }
  0x72   : > { %p2114_p8 = pnand %p2113_p1, %p2107_p11 }
  0x74   : > { %2117 = shalt.err (!%p2114_p8)
}
  0x75   : > { %s3341_s0 = smov 128   ;;  %s3343_s2 = smov 8  }
  0x76   : > { %1777 = dma.hbm_to_vmem [thread:$0]  (!%p2709_p6), %s2701_s11, 1024, %s2703_s17, %s2632_s27, %s3341_s0, %s3341_s0, %s3343_s2  }
  0x77   : > { %s1527_s25 = sadd.s32 4294967295, %s2416_s19  ;;  %s1528_s6 = sadd.s32 4294967295, %s2579_s26 }
  0x78   : > { %p168_p0 = scmp.gt.s32.totalorder %s1527_s25, 0  ;;  %p171_p11 = scmp.gt.s32.totalorder %s1528_s6, 0 }
  0x79   : > { %s178_s15 = sadd.s32 1, %s2380_s10  ;;  %p185_p3 = scmp.ne.s32.totalorder %s2380_s10, %s2376_s9 }
  0x7a   : > { %s3464_s25 = smov (!%p168_p0, %s1527_s25), 0  ;;  %s3466_s6 = smov (!%p171_p11, %s1528_s6), 0 }
  0x7b   : > { %p3395_p5 = scmp.eq.s32.totalorder %s2424_s21, 0  ;;  %p191_p12 = scmp.ne.s32.totalorder %s2376_s9, %s2372_s30 }
  0x7c   : > { %s174_s14 = ssub.s32 %s3464_s25, %s3466_s6  ;;  %s369_s11 = sand.u32 1, %s2380_s10  }
  0x7d   : > { %p2749_p10 = por %p185_p3, %p3395_p5  ;;  %s175_s17 = sor.u32 %s174_s14, %s2603_s1 }
  0x7e   : > { %p3397_p6 = scmp.eq.s32.totalorder %s2568_s22, 0  ;;  %p176_p2 = scmp.eq.s32.totalorder %s175_s17, 0 }
  0x7f   : > { %s1537_s8 = sshll.u32 %s369_s11, 6  ;;  %s1539_s0 = sshll.u32 %s3464_s25, 3 }
  0x80   : > { %p2759_p4 = por %p191_p12, %p3397_p6  ;;  %s380_s4 = sadd.s32 %s1539_s0, %s2695_s29 }
  0x81   : > { %s2764_s2 = scalar_select %p176_p2, %s2380_s10, %s178_s15  }
  0x82   : > { %s3398_s16 = scalar_select %p2759_p4, 1, 0 }
  0x83   : > { %3399 = sst [smem:[#allocation37_spill]] %s2764_s2  ;;  %s371_s20 = scalar_lea.vmem [#allocation8], %s1537_s8 }
  0x84   : > { %s383_s19 = sshll.u32 %s371_s20, 4  ;;  %s1541_s13 = sshll.u32 %s380_s4, 7  ;;  %s2767_s19 = int_to_ptr.vmem [resolvable:$true] %s383_s19 }
  0x85   : > { %s3400_s5 = sld [smem:[#allocation43_spill]]  ;;  %p3401_p9 = scmp.lt.s32.totalorder %s2424_s21, 8 }
  0x87   : > { %p2778_p13 = pnand %p3401_p9, %p2749_p10 }
  0x89   : > { %p2120_p8 = pneg %p2778_p13 }
  0x8b   : > { %s2772_s14 = scalar_lea.hbm %s3400_s5, %s1541_s13  ;;  %s2123_s0 = scalar_lea.hbm %s3400_s5, 8192 }
  0x8c   : > { %s2118_s4 = scalar_lea.hbm %s2772_s14, 1024  ;;  %p2124_p3 = scmp.lt.u32.totalorder %s2772_s14, %s3400_s5 }
  0x8d   : > { %p2119_p1 = scmp.ne.s32.totalorder %s2772_s14, %s2118_s4  ;;  %p2125_p5 = scmp.lt.u32.totalorder %s2123_s0, %s2118_s4 }
  0x8e   : > { %p2127_p12 = scmp.lt.u32.totalorder %s2118_s4, %s2772_s14 }
  0x8f   : > { %p2121_p0 = pnand %p2120_p8, %p2119_p1  ;;  %p2126_p10 = por %p2125_p5, %p2124_p3 }
  0x91   : > { %p2122_p11 = pneg %p2121_p0  ;;  %p2128_p6 = por %p2127_p12, %p2126_p10 }
  0x93   : > { %p2129_p2 = pnand %p2128_p6, %p2122_p11 }
  0x95   : > { %2132 = shalt.err (!%p2129_p2)
}
  0x96   : > { %s2133_s11 = scalar_lea.vmem %s2767_s19, 1024  ;;  %s2430_s17 = smov [#allocation8]  }
  0x97   : > { %p2134_p9 = scmp.ne.s32.totalorder %s2767_s19, %s2133_s11  ;;  %s2138_s8 = sshll.u32 %s2430_s17, 4  ;;  %s2139_s8 = int_to_ptr.vmem [resolvable:$false] %s2138_s8 }
  0x98   : > { %s2140_s30 = scalar_lea.vmem %s2139_s8, 2048  ;;  %p2141_p4 = scmp.lt.s32.totalorder %s2767_s19, %s2139_s8 }
  0x99   : > { %p2136_p1 = pnand %p2134_p9, %p2120_p8  ;;  %p2142_p3 = scmp.lt.s32.totalorder %s2140_s30, %s2133_s11 }
  0x9b   : > { %p2137_p0 = pneg %p2136_p1  ;;  %p2143_p5 = por %p2142_p3, %p2141_p4 }
  0x9d   : > { %p2144_p10 = pnand %p2143_p5, %p2137_p0 }
  0x9f   : > { %2147 = shalt.err (!%p2144_p10)
}
  0xa0   : > { %s3403_s6 = smov 8   ;;  %s3404_s4 = smov 128  }
  0xa1   : > { %1780 = dma.hbm_to_vmem [thread:$0]  (!%p2778_p13), %s2772_s14, 1024, %s2767_s19, %s2632_s27, %s3404_s4, %s3404_s4, %s3403_s6  }
  0xa2   : > { %p1529_p8 = scmp.ge.s32.totalorder %s2424_s21, 1  ;;  %p292_p11 = scmp.lt.s32.totalorder %s2424_s21, 9 }
  0xa3   : > { %s2431_s13 = smov [#allocation5]   ;;  %p3406_p6 = scmp.eq.s32.totalorder %s2568_s22, 0 }
  0xa4   : > { %s304_s20 = sshll.u32 %s2431_s13, 4  ;;  %p2813_p4 = pnand %p1529_p8, %p292_p11  ;;  %s305_s20 = int_to_ptr.vmem [resolvable:$true] %s304_s20 }
  0xa5   : > { %s204_s19 = sadd.s32 1, %s2579_s26  ;;  %s3408_s7 = sld [smem:[#allocation40_spill]] }
  0xa6   : > { %s3405_s0 = scalar_select %p2813_p4, 1, 0 }
  0xa7   : > { %p1767_p12 = pneg %p2813_p4 }
  0xa9   : > { %p2821_p2 = pnand %p1767_p12, %p3406_p6 }
  0xab   : > { %s2148_s11 = scalar_lea.hbm %s3408_s7, 3072  ;;  %p2150_p1 = pneg %p2821_p2 }
  0xac   : > { %p2149_p13 = scmp.ne.s32.totalorder %s3408_s7, %s2148_s11  ;;  %p2155_p5 = scmp.lt.u32.totalorder %s2148_s11, %s3408_s7 }
  0xae   : > { %p2151_p0 = pnand %p2150_p1, %p2149_p13 }
  0xb0   : > { %p2152_p3 = pneg %p2151_p0 }
  0xb2   : > { %p2157_p10 = pnand %p2155_p5, %p2152_p3 }
  0xb4   : > { %2160 = shalt.err (!%p2157_p10)
}
  0xb5   : > { %s2161_s5 = scalar_lea.vmem %s305_s20, 3072  ;;  %p2169_p6 = scmp.lt.s32.totalorder %s305_s20, %s305_s20 }
  0xb6   : > { %p2162_p8 = scmp.ne.s32.totalorder %s305_s20, %s2161_s5  ;;  %p2170_p9 = scmp.lt.s32.totalorder %s2161_s5, %s2161_s5 }
  0xb8   : > { %p2164_p11 = pnand %p2162_p8, %p2150_p1  ;;  %p2171_p7 = por %p2170_p9, %p2169_p6 }
  0xba   : > { %p2165_p12 = pneg %p2164_p11 }
  0xbc   : > { %p2172_p4 = pnand %p2171_p7, %p2165_p12 }
  0xbe   : > { %2175 = shalt.err (!%p2172_p4)
}
  0xbf   : > { %s2432_s14 = smov 64   ;;  %s3409_s15 = sld [smem:[#allocation22_spill]] }
  0xc0   : > { %s3410_s17 = sld [smem:[#allocation21_spill]]  ;;  %s3411_s8 = sld [smem:[#allocation20_spill]] }
  0xc1   : > { %s2433_s11 = smov 4   ;;  %p3412_p7 = scmp.lt.s32.totalorder %s2571_s23, 3 }
  0xc2   : > { %1770 = dma.hbm_to_vmem [thread:$0]  (!%p2821_p2), %s3408_s7, 3072, %s305_s20, [#allocation6], %s2432_s14, %s2432_s14, %s2433_s11  }
  0xc3   : > { %s3468_s23 = smov (!%p3412_p7, %s2571_s23), 3  ;;  %p205_p4 = scmp.lt.s32.totalorder %s204_s19, 3 }
  0xc4   : > { %p3413_p1 = scmp.eq.s32.totalorder %s2424_s21, 0  ;;  %p3415_p3 = scmp.eq.s32.totalorder %s2568_s22, 0 }
  0xc5   : > { %s212_s13 = sadd.s32 1, %s3409_s15  ;;  %s3470_s19 = smov (!%p205_p4, %s204_s19), 3 }
  0xc6   : > { %p219_p9 = scmp.ne.s32.totalorder %s3409_s15, %s3410_s17  ;;  %p225_p13 = scmp.ne.s32.totalorder %s3410_s17, %s3411_s8 }
  0xc7   : > { %s208_s20 = ssub.s32 %s3468_s23, %s3470_s19  ;;  %s395_s14 = sand.u32 1, %s3409_s15  }
  0xc8   : > { %p2853_p0 = por %p219_p9, %p3413_p1  ;;  %p2859_p5 = por %p225_p13, %p3415_p3 }
  0xc9   : > { %s209_s11 = sor.u32 %s208_s20, %s2603_s1  ;;  %s1542_s30 = sshll.u32 %s395_s14, 6 }
  0xca   : > { %p210_p2 = scmp.eq.s32.totalorder %s209_s11, 0  ;;  %s1543_s5 = sshll.u32 %s3468_s23, 3 }
  0xcb   : > { %s397_s17 = scalar_lea.vmem [#allocation9], %s1542_s30  ;;  %s406_s7 = sadd.s32 %s1543_s5, %s2695_s29 }
  0xcc   : > { %s409_s8 = sshll.u32 %s397_s17, 4  ;;  %s3472_s15 = smov (!%p210_p2, %s3409_s15), %s212_s13  ;;  %s2869_s8 = int_to_ptr.vmem [resolvable:$true] %s409_s8 }
  0xcd   : > { %s1545_s2 = sshll.u32 %s406_s7, 7  ;;  %p3417_p10 = scmp.lt.s32.totalorder %s2424_s21, 8 }
  0xce   : > { %s3419_s1 = sld [smem:[#allocation44_spill]] }
  0xcf   : > { %p2875_p8 = pnand %p3417_p10, %p2853_p0 }
  0xd1   : > { %p2178_p12 = pneg %p2875_p8 }
  0xd4   : > { %s2882_s23 = scalar_lea.hbm %s3419_s1, %s1545_s2  ;;  %s2181_s24 = scalar_lea.hbm %s3419_s1, 8192 }
  0xd5   : > { %s2176_s29 = scalar_lea.hbm %s2882_s23, 1024  ;;  %p2182_p4 = scmp.lt.u32.totalorder %s2882_s23, %s3419_s1 }
  0xd6   : > { %p2177_p11 = scmp.ne.s32.totalorder %s2882_s23, %s2176_s29  ;;  %p2183_p9 = scmp.lt.u32.totalorder %s2181_s24, %s2176_s29 }
  0xd7   : > { %p2185_p1 = scmp.lt.u32.totalorder %s2176_s29, %s2882_s23 }
  0xd8   : > { %p2179_p6 = pnand %p2178_p12, %p2177_p11  ;;  %p2184_p13 = por %p2183_p9, %p2182_p4 }
  0xda   : > { %p2180_p7 = pneg %p2179_p6  ;;  %p2186_p0 = por %p2185_p1, %p2184_p13 }
  0xdc   : > { %p2187_p3 = pnand %p2186_p0, %p2180_p7 }
  0xde   : > { %2190 = shalt.err (!%p2187_p3)
}
  0xdf   : > { %s2191_s2 = scalar_lea.vmem %s2869_s8, 1024  ;;  %s2434_s14 = smov [#allocation9]  }
  0xe0   : > { %p2192_p2 = scmp.ne.s32.totalorder %s2869_s8, %s2191_s2  ;;  %s2196_s11 = sshll.u32 %s2434_s14, 4  ;;  %s2197_s11 = int_to_ptr.vmem [resolvable:$false] %s2196_s11 }
  0xe1   : > { %s2198_s30 = scalar_lea.vmem %s2197_s11, 2048  ;;  %p2199_p6 = scmp.lt.s32.totalorder %s2869_s8, %s2197_s11 }
  0xe2   : > { %p2194_p10 = pnand %p2192_p2, %p2178_p12  ;;  %p2200_p4 = scmp.lt.s32.totalorder %s2198_s30, %s2191_s2 }
  0xe4   : > { %p2195_p11 = pneg %p2194_p10  ;;  %p2201_p9 = por %p2200_p4, %p2199_p6 }
  0xe6   : > { %p2202_p13 = pnand %p2201_p9, %p2195_p11 }
  0xe8   : > { %2205 = shalt.err (!%p2202_p13)
}
  0xe9   : > { %1783 = dma.hbm_to_vmem [thread:$0]  (!%p2875_p8), %s2882_s23, 1024, %s2869_s8, %s2632_s27, %s3404_s4, %s3404_s4, %s3403_s6  }
  0xea   : > { %p3420_p12 = scmp.ne.s32.totalorder %s3405_s0, 0 }
  0xeb   : > { %s3421_s5 = sld [smem:[#allocation26_spill]] (!%p3420_p12)  ;;  %s423_s17 = sand.u32 (!%p3420_p12), 1, %s2568_s22  }
  0xec   : > { %421 = sbr.rel (%p3420_p12) target bundleno = 621 (0x26d), region = 48  ;;  %s424_s29 = scalar_lea.sflag (!%p3420_p12), [#allocation3], %s423_s17 }
  0xed   : > { %p3422_p7 = scmp.ne.s32.totalorder (!%p3420_p12), %s3379_s3, 0 }
  0xf1   : > { %s425_s19 = sand.u32 (!%p3420_p12), 1, %s3421_s5  }
  0xf2   : > { %s2917_s26 = scalar_lea.vmem (!%p3420_p12), [#allocation2], %s425_s19 }
  0xf3   : > { %2331 = dma.done.wait (%p3422_p7), %s424_s29, 16  }
  0xf4   : > { %2333 = vsyncadd (%p3422_p7), %s424_s29, 4294967280  ;;  %p3423_p1 = scmp.eq.s32.totalorder %s2568_s22, 0 }
  0xf6   : > { %2335 = dma.done.wait (%p3423_p1), [#allocation6], 3072   ;;  %p3424_p8 = pmov %p3423_p1 }
  0xf7   : > { %s2928_s10 = sand.u32 1, %s2388_s12   ;;  %p3425_p0 = scmp.ne.s32.totalorder %s3388_s18, 0 }
  0xf8   : > { %2337 = vsyncadd (%p3424_p8), [#allocation6], 4294964224  ;;  %s1548_s27 = sshll.u32 %s2928_s10, 6 }
  0xf9   : > { %s2933_s6 = scalar_lea.vmem [#allocation7], %s1548_s27 }
  0xfa   : > { %2339 = dma.done.wait (%p3425_p0), %s424_s29, 1024  }
  0xfb   : > { %2341 = vsyncadd (%p3425_p0), %s424_s29, 4294966272  ;;  %s446_s3 = sand.u32 1, %s2376_s9   ;;  %p3426_p3 = scmp.ne.s32.totalorder %s3398_s16, 0 }
  0xfc   : > { %s1549_s22 = sshll.u32 %s446_s3, 6 }
  0xfd   : > { %s2940_s4 = scalar_lea.vmem [#allocation8], %s1549_s22 }
  0xfe   : > { %2343 = dma.done.wait (%p3426_p3), %s424_s29, 1024  }
  0xff   : > { %2345 = vsyncadd (%p3426_p3), %s424_s29, 4294966272  ;;  %s3427_s0 = sld [smem:[#allocation21_spill]] }
 0x105   : > { %s455_s8 = sand.u32 1, %s3427_s0  }
 0x106   : > { %s1550_s23 = sshll.u32 %s455_s8, 6 }
 0x107   : > { %s2947_s7 = scalar_lea.vmem [#allocation9], %s1550_s23 }
 0x108   : > { %2347 = dma.done.wait (%p2859_p5), %s424_s29, 1024  }
 0x109   : > { %2349 = vsyncadd (%p2859_p5), %s424_s29, 4294966272  ;;  %s3428_s18 = sld [smem:[#allocation29_spill]]  ;;  %s3429_s24 = sld [smem:[#allocation28_spill]]  ;;  %v1938_v0 = vld [vmem:[#allocation5 + $0x40] sm:$0xff]   ;;  %v1940_v2 = vld [vmem:[#allocation5 + $0x48] sm:$0xff]   ;;  %v541_v6 = vlaneseq }
 0x10a   : > { %v1939_v1 = vld [vmem:[#allocation5] sm:$0xff]   ;;  %1671 = vmatprep.subr.bf16.mxu0 %v1938_v0  ;;  %v1941_v3 = vld [vmem:[#allocation5 + $0x8] sm:$0xff]   ;;  %v1942_v4 = vld [vmem:[#allocation5 + $0x50] sm:$0xff]   ;;  %s3430_s2 = sld [smem:[#allocation39_spill]]  ;;  %s3431_s17 = sld [smem:[#allocation41_spill]] }
 0x10b   : > { %1672 = vmatpush3.bf16.msra.mxu0 %v1938_v0  ;;  %1647 = vmatprep.subr.bf16.mxu1 %v1939_v1  ;;  %v1943_v5 = vld [vmem:[#allocation5 + $0x10] sm:$0xff]   ;;  %v1944_v7 = vld [vmem:[#allocation5 + $0x58] sm:$0xff]   ;;  %v542_v9 = vshrl.u32 %v541_v6, 7  ;;  %v1946_v10 = vld [vmem:[#allocation5 + $0x60] sm:$0xff]   ;;  %s3432_s0 = sld [smem:[#allocation45_spill]]  ;;  %s1284_s23 = scalar_lea.sflag [#allocation4], %s2928_s10 }
 0x10c   : > { %1648 = vmatpush3.bf16.msra.mxu1 %v1939_v1  ;;  %1673 = vmatprep.subr.bf16.mxu0 %v1940_v2  ;;  %v1945_v8 = vld [vmem:[#allocation5 + $0x18] sm:$0xff]   ;;  %v1947_v11 = vld [vmem:[#allocation5 + $0x20] sm:$0xff]   ;;  %v1948_v13 = vld [vmem:[#allocation5 + $0x68] sm:$0xff]   ;;  %p3433_p6 = scmp.ne.s32.totalorder %s3389_s28, 0 }
 0x10d   : > { %1649 = vmatprep.subr.bf16.mxu1 %v1941_v3  ;;  %v2959_v12 = vsub.s32 0, %v542_v9  ;;  %v1949_v14 = vld [vmem:[#allocation5 + $0x28] sm:$0xff]   ;;  %v2962_v16 = vld [vmem:[%s2917_s26] sm:$0x1]  ;;  %v532_v18 = vld [vmem:[%s2933_s6] sm:$0xff] }
 0x10e   : > { %v533_v19 = vld [vmem:[%s2933_s6 + $0x8] sm:$0xff]  ;;  %v1950_v22 = vld [vmem:[#allocation5 + $0x70] sm:$0xff]   ;;  %v535_v24 = vld [vmem:[%s2933_s6 + $0x18] sm:$0xff] }
 0x10f   : > { %p512_p2 = scmp.lt.s32.totalorder %s3428_s18, 1  ;;  %1674 = vmatpush3.bf16.msra.mxu0 %v1940_v2  ;;  %p528_p10 = scmp.ge.s32.totalorder %s3429_s24, 1  ;;  %v2970_v20 = vrot.slane %v2962_v16, %v2959_v12  ;;  %v534_v23 = vld [vmem:[%s2933_s6 + $0x10] sm:$0xff]  ;;  %v645_v31 = vld [vmem:[%s2940_s4] sm:$0xff]  ;;  %v646_v32 = vld [vmem:[%s2940_s4 + $0x8] sm:$0xff] }
 0x110   : > { %1650 = vmatpush3.bf16.msra.mxu1 %v1941_v3  ;;  %1675 = vmatprep.subr.bf16.mxu0 %v1942_v4  ;;  %p530_p5 = scmp.lt.s32.totalorder %s3429_s24, 3  ;;  %v647_v33 = vld [vmem:[%s2940_s4 + $0x10] sm:$0xff]  ;;  %v648_v36 = vld [vmem:[%s2940_s4 + $0x18] sm:$0xff]  ;;  %v649_v56 = vld [vmem:[%s2940_s4 + $0x20] sm:$0xff]  ;;  %s1604_s19 = sshll.u32 %s3429_s24, 3 }
 0x111   : > { %s513_s16 = scalar_select %p512_p2, %s3428_s18, 1  ;;  %1651 = vmatprep.subr.bf16.mxu1 %v1943_v5  ;;  %v546_v27 = vmul.f32 %v2970_v20, %v532_v18  ;;  %v547_v28 = vmul.f32 %v2970_v20, %v533_v19  ;;  %v548_v29 = vmul.f32 %v2970_v20, %v534_v23  ;;  %v549_v30 = vmul.f32 %v2970_v20, %v535_v24  ;;  %v1951_v37 = vld [vmem:[#allocation5 + $0x30] sm:$0xff]   ;;  %v1952_v49 = vld [vmem:[#allocation5 + $0x78] sm:$0xff]   ;;  %v650_v57 = vld [vmem:[%s2940_s4 + $0x28] sm:$0xff] }
 0x112   : > { %s529_s25 = scalar_select %p528_p10, 1.0, 0.0  ;;  %v1953_v50 = vld [vmem:[#allocation5 + $0x38] sm:$0xff]   ;;  %v536_v0 = vld [vmem:[%s2933_s6 + $0x20] sm:$0xff]  ;;  %v537_v1 = vld [vmem:[%s2933_s6 + $0x28] sm:$0xff] }
 0x113   : > { %1676 = vmatpush3.bf16.msra.mxu0 %v1942_v4  ;;  %s514_s14 = scalar_lea.vmem %s3430_s2, %s513_s16  ;;  %v3041_v2 = vld [vmem:[#allocation5 + $0x80] sm:$0xff]   ;;  %v550_v4 = vmul.f32 %v2970_v20, %v536_v0  ;;  %v651_v6 = vld [vmem:[%s2940_s4 + $0x30] sm:$0xff]  ;;  %s1605_s29 = sshll.u32 %s3428_s18, 5 }
 0x114   : > { %1652 = vmatpush3.bf16.msra.mxu1 %v1943_v5  ;;  %1677 = vmatprep.subr.bf16.mxu0 %v1944_v7  ;;  %v653_v15 = vstv %s529_s25  ;;  %v2964_v17 = vld [vmem:[%s514_s14] sm:$0x1]  ;;  %s3009_s11 = scalar_select %p530_p5, 1.0, 0.0  ;;  %v551_v5 = vmul.f32 %v2970_v20, %v537_v1  ;;  %v990_v1 = vld [vmem:[%s2947_s7 + $0x20] sm:$0xff] }
 0x115   : > { %1653 = vmatprep.subr.bf16.mxu1 %v1945_v8  ;;  %v2974_v21 = vrot.slane %v2964_v17, %v2959_v12  ;;  %v654_v25 = vmul.f32 %v653_v15, %v2962_v16  ;;  %v669_v26 = vmul.f32 %v653_v15, %v2964_v17  ;;  %s3175_s26 = sadd.s32 %s1605_s29, %s1604_s19  ;;  %s2435_s16 = smov [#allocation10]  }
 0x116   : > { %v994_v58 = vstv %s3009_s11  ;;  %s2210_s25 = sshll.u32 %s2435_s16, 4  ;;  %s2211_s25 = int_to_ptr.vmem [resolvable:$false] %s2210_s25 }
 0x117   : > { %1678 = vmatpush3.bf16.msra.mxu0 %v1944_v7  ;;  %v2989_v34 = vrot.slane %v654_v25, %v2959_v12  ;;  %v2992_v35 = vrot.slane %v669_v26, %v2959_v12  ;;  %v2996_v38 = vadd.f32 %v2974_v21, %v546_v27  ;;  %v2999_v39 = vadd.f32 %v2974_v21, %v547_v28  ;;  %v538_v25 = vld [vmem:[%s2933_s6 + $0x30] sm:$0xff]  ;;  %v539_v28 = vld [vmem:[%s2933_s6 + $0x38] sm:$0xff]  ;;  %s3179_s6 = scalar_lea.vmem [#allocation10], %s1548_s27  ;;  %s1606_s27 = sshll.u32 %s3175_s26, 7 }
 0x118   : > { %1654 = vmatpush3.bf16.msra.mxu1 %v1945_v8  ;;  %1679 = vmatprep.subr.bf16.mxu0 %v1946_v10  ;;  %v3002_v40 = vadd.f32 %v2974_v21, %v548_v29  ;;  %v3005_v41 = vadd.f32 %v2974_v21, %v549_v30  ;;  %v995_v19 = vmul.f32 %v994_v58, %v2962_v16  ;;  %s1304_s3 = sshll.u32 %s3179_s6, 4  ;;  %s3194_s8 = scalar_lea.hbm %s3432_s0, %s1606_s27  ;;  %s3185_s3 = int_to_ptr.vmem [resolvable:$true] %s1304_s3 }
 0x119   : > { %1655 = vmatprep.subr.bf16.mxu1 %v1947_v11  ;;  %v661_v42 = vmul.f32 %v2989_v34, %v645_v31  ;;  %v662_v43 = vmul.f32 %v2989_v34, %v646_v32  ;;  %v663_v44 = vmul.f32 %v2989_v34, %v647_v33  ;;  %v664_v45 = vmul.f32 %v2989_v34, %v648_v36  ;;  %s2212_s13 = scalar_lea.vmem %s2211_s25, 2048  ;;  %p2213_p13 = scmp.lt.s32.totalorder %s3185_s3, %s2211_s25 }
 0x11a   : > { %v1553_v46 = vmul.f32 -1.442695, %v2996_v38  ;;  %v1554_v47 = vmul.f32 -1.442695, %v2999_v39  ;;  %v1555_v48 = vmul.f32 -1.442695, %v3002_v40  ;;  %v665_v62 = vmul.f32 %v2989_v34, %v649_v56 }
 0x11b   : > { %1680 = vmatpush3.bf16.msra.mxu0 %v1946_v10  ;;  %v1556_v51 = vmul.f32 -1.442695, %v3005_v41  ;;  %v3020_v52 = vadd.f32 %v2992_v35, %v661_v42  ;;  %v3023_v53 = vadd.f32 %v2992_v35, %v662_v43  ;;  %v3026_v54 = vadd.f32 %v2992_v35, %v663_v44  ;;  %v987_v42 = vld [vmem:[%s2947_s7 + $0x8] sm:$0xff]  ;;  %v988_v56 = vld [vmem:[%s2947_s7 + $0x10] sm:$0xff] }
 0x11c   : > { %1656 = vmatpush3.bf16.msra.mxu1 %v1947_v11  ;;  %1681 = vmatprep.subr.bf16.mxu0 %v1948_v13  ;;  %1962 = vpow2.f32 %v1553_v46  ;;  %v3029_v55 = vadd.f32 %v2992_v35, %v664_v45  ;;  %v666_v63 = vmul.f32 %v2989_v34, %v650_v57  ;;  %v3048_v7 = vadd.f32 %v2992_v35, %v665_v62 }
 0x11d   : > { %1657 = vmatprep.subr.bf16.mxu1 %v1949_v14  ;;  %1964 = vpow2.f32 %v1554_v47  ;;  %v1561_v59 = vmul.f32 -1.442695, %v3020_v52  ;;  %v1562_v60 = vmul.f32 -1.442695, %v3023_v53  ;;  %v1563_v61 = vmul.f32 -1.442695, %v3026_v54 }
 0x11e   : > { %1966 = vpow2.f32 %v1555_v48  ;;  %v1564_v3 = vmul.f32 -1.442695, %v3029_v55  ;;  %v3051_v8 = vadd.f32 %v2992_v35, %v666_v63  ;;  %v667_v9 = vmul.f32 %v2989_v34, %v651_v6  ;;  %v991_v6 = vld [vmem:[%s2947_s7 + $0x28] sm:$0xff] }
 0x11f   : > { %1682 = vmatpush3.bf16.msra.mxu0 %v1948_v13  ;;  %1968 = vpow2.f32 %v1556_v51  ;;  %v3055_v10 = vadd.f32 %v2974_v21, %v550_v4  ;;  %v3058_v11 = vadd.f32 %v2974_v21, %v551_v5  ;;  %v652_v13 = vld [vmem:[%s2940_s4 + $0x38] sm:$0xff]  ;;  %v1010_v27 = vmul.f32 %v994_v58, %v2964_v17 }
 0x120   : > { %1658 = vmatpush3.bf16.msra.mxu1 %v1949_v14  ;;  %1683 = vmatprep.subr.bf16.mxu0 %v1950_v22  ;;  %1970 = vpow2.f32 %v1561_v59  ;;  %v1565_v14 = vmul.f32 -1.442695, %v3048_v7  ;;  %v1566_v15 = vmul.f32 -1.442695, %v3051_v8  ;;  %v3064_v18 = vadd.f32 %v2992_v35, %v667_v9 }
 0x121   : > { %1659 = vmatprep.subr.bf16.mxu1 %v1951_v37  ;;  %1972 = vpow2.f32 %v1562_v60  ;;  %v1558_v23 = vmul.f32 -1.442695, %v3058_v11  ;;  %v668_v16 = vmul.f32 %v2989_v34, %v652_v13  ;;  %v3077_v31 = vrot.slane %v995_v19, %v2959_v12  ;;  %v989_v60 = vld [vmem:[%s2947_s7 + $0x18] sm:$0xff]  ;;  %v992_v19 = vld [vmem:[%s2947_s7 + $0x30] sm:$0xff] }
 0x122   : > { %1974 = vpow2.f32 %v1563_v61  ;;  %v1567_v24 = vmul.f32 -1.442695, %v3064_v18  ;;  %v552_v36 = vmul.f32 %v2970_v20, %v538_v25  ;;  %v553_v34 = vmul.f32 %v2970_v20, %v539_v28 }
 0x123   : > { %1684 = vmatpush3.bf16.msra.mxu0 %v1950_v22  ;;  %1976 = vpow2.f32 %v1564_v3  ;;  %v1557_v22 = vmul.f32 -1.442695, %v3055_v10  ;;  %v3084_v46 = vadd.f32 %v2992_v35, %v668_v16  ;;  %v3087_v47 = vrot.slane %v1010_v27, %v2959_v12 }
 0x124   : > { %1660 = vmatpush3.bf16.msra.mxu1 %v1951_v37  ;;  %1685 = vmatprep.subr.bf16.mxu0 %v1952_v49  ;;  %1978 = vpow2.f32 %v1565_v14  ;;  %v986_v37 = vld [vmem:[%s2947_s7] sm:$0xff]  ;;  %v1003_v51 = vmul.f32 %v3077_v31, %v987_v42  ;;  %v3093_v58 = vadd.f32 %v2974_v21, %v552_v36  ;;  %v3096_v59 = vadd.f32 %v2974_v21, %v553_v34 }
 0x125   : > { %1661 = vmatprep.subr.bf16.mxu1 %v1953_v50  ;;  %1980 = vpow2.f32 %v1566_v15  ;;  %v1568_v63 = vmul.f32 -1.442695, %v3084_v46  ;;  %v1004_v0 = vmul.f32 %v3077_v31, %v988_v56  ;;  %v1005_v15 = vmul.f32 %v3077_v31, %v989_v60 }
 0x126   : > { %v1963_v26 = vpop.eup %1962  ;;  %1982 = vpow2.f32 %v1557_v22  ;;  %v3106_v21 = vadd.f32 %v3087_v47, %v1003_v51  ;;  %v1559_v14 = vmul.f32 -1.442695, %v3093_v58  ;;  %v1006_v25 = vmul.f32 %v3077_v31, %v990_v1 }
 0x127   : > { %1686 = vmatpush3.bf16.msra.mxu0 %v1952_v49  ;;  %v1965_v29 = vpop.eup %1964  ;;  %v592_v30 = vadd.f32 1.0, %v1963_v26  ;;  %1984 = vpow2.f32 %v1558_v23  ;;  %v993_v26 = vld [vmem:[%s2947_s7 + $0x38] sm:$0xff]  ;;  %v3116_v28 = vadd.f32 %v3087_v47, %v1004_v0  ;;  %v1008_v36 = vmul.f32 %v3077_v31, %v992_v19  ;;  %s2206_s7 = scalar_lea.vmem %s3185_s3, 1024 }
 0x128   : > { %1662 = vmatpush3.bf16.msra.mxu1 %v1953_v50  ;;  %1695 = vmatprep.subr.bf16.mxu0 %v3041_v2  ;;  %v1967_v32 = vpop.eup %1966  ;;  %v593_v33 = vadd.f32 1.0, %v1965_v29  ;;  %1986 = vpow2.f32 %v1567_v24  ;;  %v1002_v50 = vmul.f32 %v3077_v31, %v986_v37  ;;  %v1560_v24 = vmul.f32 -1.442695, %v3096_v59  ;;  %p2207_p11 = scmp.ne.s32.totalorder %s3185_s3, %s2206_s7  ;;  %p2214_p12 = scmp.lt.s32.totalorder %s2212_s13, %s2206_s7 }
 0x129   : > { %1719 = vmatprep.subr.bf16.mxu1 %v3041_v2  ;;  %v1969_v43 = vpop.eup %1968  ;;  %1988 = vrcp.f32 %v592_v30  ;;  %v594_v17 = vadd.f32 1.0, %v1967_v32  ;;  %v1007_v29 = vmul.f32 %v3077_v31, %v991_v6 }
 0x12a   : > { %v1971_v44 = vpop.eup %1970  ;;  %1990 = vrcp.f32 %v593_v33  ;;  %v595_v45 = vadd.f32 1.0, %v1969_v43  ;;  %v3103_v5 = vadd.f32 %v3087_v47, %v1002_v50  ;;  %v3123_v43 = vadd.f32 %v3087_v47, %v1005_v15  ;;  %v1956_v15 = vld [vmem:[#allocation5 + $0x90] sm:$0xff]   ;;  %p2208_p4 = pnand %p2207_p11, %p3433_p6  ;;  %p2215_p7 = por %p2214_p12, %p2213_p13 }
 0x12b   : > { %v1973_v48 = vpop.eup %1972  ;;  %1992 = vrcp.f32 %v594_v17  ;;  %v708_v49 = vadd.f32 1.0, %v1971_v44  ;;  %v1009_v17 = vmul.f32 %v3077_v31, %v993_v26  ;;  %v3134_v51 = vadd.f32 %v3087_v47, %v1007_v29 }
 0x12c   : > { %v1975_v20 = vpop.eup %1974  ;;  %1994 = vrcp.f32 %v595_v45  ;;  %v709_v57 = vadd.f32 1.0, %v1973_v48  ;;  %v1585_v33 = vmul.f32 -1.442695, %v3103_v5  ;;  %v1586_v45 = vmul.f32 -1.442695, %v3106_v21  ;;  %p2209_p9 = pneg %p2208_p4 }
 0x12d   : > { %v1977_v35 = vpop.eup %1976  ;;  %1996 = vrcp.f32 %v708_v49  ;;  %v710_v12 = vadd.f32 1.0, %v1975_v20  ;;  %v3129_v48 = vadd.f32 %v3087_v47, %v1006_v25 }
 0x12e   : > { %v1979_v61 = vpop.eup %1978  ;;  %1998 = vrcp.f32 %v709_v57  ;;  %v711_v62 = vadd.f32 1.0, %v1977_v35  ;;  %p2216_p1 = pnand %p2215_p7, %p2209_p9 }
 0x12f   : > { %v1981_v3 = vpop.eup %1980  ;;  %2000 = vrcp.f32 %v710_v12  ;;  %v712_v4 = vadd.f32 1.0, %v1979_v61  ;;  %v3143_v12 = vadd.f32 %v3087_v47, %v1009_v17 }
 0x130   : > { %v1983_v9 = vpop.eup %1982  ;;  %2002 = vrcp.f32 %v711_v62  ;;  %v713_v13 = vadd.f32 1.0, %v1981_v3 }
 0x131   : > { %v1985_v22 = vpop.eup %1984  ;;  %2004 = vrcp.f32 %v712_v4  ;;  %v596_v23 = vadd.f32 1.0, %v1983_v9 }
 0x132   : > { %v1987_v27 = vpop.eup %1986  ;;  %2006 = vrcp.f32 %v713_v13  ;;  %v597_v16 = vadd.f32 1.0, %v1985_v22  ;;  %v1592_v13 = vmul.f32 -1.442695, %v3143_v12 }
 0x133   : > { %v1989_v30 = vpop.eup %1988  ;;  %2008 = vrcp.f32 %v596_v23  ;;  %v714_v32 = vadd.f32 1.0, %v1987_v27 }
 0x134   : > { %v1991_v37 = vpop.eup %1990  ;;  %v616_v42 = vmul.f32 %v1989_v30, %v2996_v38  ;;  %2010 = vrcp.f32 %v597_v16  ;;  %v1587_v38 = vmul.f32 -1.442695, %v3116_v28 }
 0x135   : > { %v1993_v34 = vpop.eup %1992  ;;  %v617_v44 = vmul.f32 %v1991_v37, %v2999_v39  ;;  %2012 = vpow2.f32 %v1568_v63  ;;  %v3138_v39 = vadd.f32 %v3087_v47, %v1008_v36  ;;  %v1955_v63 = vld [vmem:[#allocation5 + $0x88] sm:$0xff]   ;;  %v1958_v36 = vld [vmem:[#allocation5 + $0xa0] sm:$0xff]  }
 0x136   : > { %v1995_v49 = vpop.eup %1994  ;;  %v618_v50 = vmul.f32 %v1993_v34, %v3002_v40  ;;  %2014 = vrcp.f32 %v714_v32  ;;  %v1588_v40 = vmul.f32 -1.442695, %v3123_v43 }
 0x137   : > { %v1997_v56 = vpop.eup %1996  ;;  %v624_v31 = vpack.c.bf16 %v617_v44, %v616_v42  ;;  %v619_v20 = vmul.f32 %v1995_v49, %v3005_v41  ;;  %2016 = vpow2.f32 %v1559_v14  ;;  %v1589_v41 = vmul.f32 -1.442695, %v3129_v48 }
 0x138   : > { %v1999_v57 = vpop.eup %1998  ;;  %v732_v35 = vmul.f32 %v1997_v56, %v3020_v52  ;;  %2018 = vpow2.f32 %v1560_v24  ;;  %v1590_v52 = vmul.f32 -1.442695, %v3134_v51  ;;  %v1591_v6 = vmul.f32 -1.442695, %v3138_v39 }
 0x139   : > { %v2001_v60 = vpop.eup %2000  ;;  %1687 = vmatprep.mubr.bf16.mxu0 %v624_v31  ;;  %v625_v61 = vpack.c.bf16 %v619_v20, %v618_v50  ;;  %v733_v62 = vmul.f32 %v1999_v57, %v3023_v53  ;;  %2020 = vpow2.f32 %v1585_v33 }
 0x13a   : > { %v2003_v0 = vpop.eup %2002  ;;  %v734_v1 = vmul.f32 %v2001_v60, %v3026_v54  ;;  %2022 = vpow2.f32 %v1586_v45 }
 0x13b   : > { %v2005_v3 = vpop.eup %2004  ;;  %1688 = vmatmul.mubr.bf16.vlgmr.msra.gmra.mrb[0].mxu0 %v625_v61  ;;  %v740_v4 = vpack.c.bf16 %v733_v62, %v732_v35  ;;  %v735_v47 = vmul.f32 %v2003_v0, %v3029_v55  ;;  %2024 = vpow2.f32 %v1587_v38  ;;  %v1959_v38 = vld [vmem:[#allocation5 + $0xa8] sm:$0xff]   ;;  %v1960_v62 = vld [vmem:[#allocation5 + $0xb0] sm:$0xff]  }
 0x13c   : > { %v2007_v9 = vpop.eup %2006  ;;  %1696 = vmatpush3.bf16.msra.mxu0 %v3041_v2  ;;  %v736_v53 = vmul.f32 %v2005_v3, %v3048_v7  ;;  %2026 = vpow2.f32 %v1588_v40 }
 0x13d   : > { %v2009_v54 = vpop.eup %2008  ;;  %1663 = vmatprep.mubr.bf16.mxu1 %v740_v4  ;;  %v741_v14 = vpack.c.bf16 %v735_v47, %v734_v1  ;;  %1697 = vmatprep.subr.bf16.mxu0 %v1955_v63  ;;  %v737_v19 = vmul.f32 %v2007_v9, %v3051_v8  ;;  %2028 = vpow2.f32 %v1589_v41  ;;  %v1957_v8 = vld [vmem:[#allocation5 + $0x98] sm:$0xff]  }
 0x13e   : > { %v2011_v55 = vpop.eup %2010  ;;  %v620_v22 = vmul.f32 %v2009_v54, %v3055_v10  ;;  %2030 = vpow2.f32 %v1590_v52 }
 0x13f   : > { %v2013_v23 = vpop.eup %2012  ;;  %1664 = vmatmul.mubr.bf16.vlgmr.msra.gmra.mrb[0].mxu1 %v741_v14  ;;  %v742_v24 = vpack.c.bf16 %v737_v19, %v736_v53  ;;  %v621_v7 = vmul.f32 %v2011_v55, %v3058_v11  ;;  %2032 = vpow2.f32 %v1591_v6 }
 0x140   : > { %v2015_v25 = vpop.eup %2014  ;;  %1727 = vmatpush3.bf16.msra.mxu1 %v3041_v2  ;;  %1698 = vmatpush3.bf16.msra.mxu0 %v1955_v63  ;;  %v715_v26 = vadd.f32 1.0, %v2013_v23  ;;  %2034 = vpow2.f32 %v1592_v13 }
 0x141   : > { %v2017_v27 = vpop.eup %2016  ;;  %1720 = vmatprep.subr.bf16.mxu1 %v1955_v63  ;;  %1699 = vmatprep.subr.bf16.mxu0 %v1956_v15  ;;  %v626_v16 = vpack.c.bf16 %v621_v7, %v620_v22  ;;  %v738_v57 = vmul.f32 %v2015_v25, %v3064_v18 }
 0x142   : > { %v2019_v29 = vpop.eup %2018  ;;  %1667 = vmatprep.mubr.bf16.mxu1 %v742_v24  ;;  %2036 = vrcp.f32 %v715_v26  ;;  %v598_v10 = vadd.f32 1.0, %v2017_v27 }
 0x143   : > { %v2021_v30 = vpop.eup %2020  ;;  %1691 = vmatprep.mubr.bf16.mxu0 %v626_v16  ;;  %v599_v32 = vadd.f32 1.0, %v2019_v29 }
 0x144   : > { %v2023_v11 = vpop.eup %2022  ;;  %1728 = vmatpush3.bf16.msra.mxu1 %v1955_v63  ;;  %1700 = vmatpush3.bf16.msra.mxu0 %v1956_v15  ;;  %2038 = vrcp.f32 %v598_v10  ;;  %v1049_v2 = vadd.f32 1.0, %v2021_v30 }
 0x145   : > { %v2025_v33 = vpop.eup %2024  ;;  %1721 = vmatprep.subr.bf16.mxu1 %v1956_v15  ;;  %1701 = vmatprep.subr.bf16.mxu0 %v1957_v8  ;;  %2040 = vrcp.f32 %v599_v32  ;;  %v1050_v37 = vadd.f32 1.0, %v2023_v11 }
 0x146   : > { %v2027_v42 = vpop.eup %2026  ;;  %2042 = vrcp.f32 %v1049_v2  ;;  %v1051_v17 = vadd.f32 1.0, %v2025_v33  ;;  %v1601_v2 = vld [vmem:[%s3431_s17] ss:$0 sm:$0xff] }
 0x147   : > { %v2029_v34 = vpop.eup %2028  ;;  %2044 = vrcp.f32 %v1050_v37  ;;  %v1052_v44 = vadd.f32 1.0, %v2027_v42 }
 0x148   : > { %v2031_v45 = vpop.eup %2030  ;;  %1729 = vmatpush3.bf16.msra.mxu1 %v1956_v15  ;;  %1702 = vmatpush3.bf16.msra.mxu0 %v1957_v8  ;;  %2046 = vrcp.f32 %v1051_v17  ;;  %v1053_v49 = vadd.f32 1.0, %v2029_v34 }
 0x149   : > { %v2033_v50 = vpop.eup %2032  ;;  %1722 = vmatprep.subr.bf16.mxu1 %v1957_v8  ;;  %1703 = vmatprep.subr.bf16.mxu0 %v1958_v36  ;;  %2048 = vrcp.f32 %v1052_v44  ;;  %v1054_v56 = vadd.f32 1.0, %v2031_v45 }
 0x14a   : > { %v2035_v31 = vpop.eup %2034  ;;  %2050 = vrcp.f32 %v1053_v49  ;;  %v1055_v20 = vadd.f32 1.0, %v2033_v50 }
 0x14b   : > { %2052 = vrcp.f32 %v1054_v56  ;;  %v1056_v35 = vadd.f32 1.0, %v2035_v31 }
 0x14c   : > { %v2037_v40 = vpop.eup %2036  ;;  %1730 = vmatpush3.bf16.msra.mxu1 %v1957_v8  ;;  %1704 = vmatpush3.bf16.msra.mxu0 %v1958_v36  ;;  %2054 = vrcp.f32 %v1055_v20 }
 0x14d   : > { %1723 = vmatprep.subr.bf16.mxu1 %v1958_v36  ;;  %1705 = vmatprep.subr.bf16.mxu0 %v1959_v38  ;;  %v739_v60 = vmul.f32 %v2037_v40, %v3084_v46  ;;  %2056 = vrcp.f32 %v1056_v35  ;;  %v1961_v46 = vld [vmem:[#allocation5 + $0xb8] sm:$0xff]  }
 0x14e   : > { %v2039_v61 = vpop.eup %2038 }
 0x14f   : > { %v2041_v63 = vpop.eup %2040  ;;  %v743_v41 = vpack.c.bf16 %v739_v60, %v738_v57  ;;  %v622_v0 = vmul.f32 %v2039_v61, %v3093_v58 }
 0x150   : > { %v2043_v1 = vpop.eup %2042  ;;  %1731 = vmatpush3.bf16.msra.mxu1 %v1958_v36  ;;  %v623_v18 = vmul.f32 %v2041_v63, %v3096_v59  ;;  %1706 = vmatpush3.bf16.msra.mxu0 %v1959_v38 }
 0x151   : > { %v2045_v52 = vpop.eup %2044  ;;  %1668 = vmatmul.mubr.bf16.gmra.mrb[4].mxu1 %v743_v41  ;;  %1724 = vmatprep.subr.bf16.mxu1 %v1959_v38  ;;  %v1073_v3 = vmul.f32 %v2043_v1, %v3103_v5 }
 0x152   : > { %v2047_v4 = vpop.eup %2046  ;;  %v627_v47 = vpack.c.bf16 %v623_v18, %v622_v0  ;;  %1707 = vmatprep.subr.bf16.mxu0 %v1960_v62  ;;  %v1074_v6 = vmul.f32 %v2045_v52, %v3106_v21 }
 0x153   : > { %v2049_v9 = vpop.eup %2048  ;;  %v1075_v13 = vmul.f32 %v2047_v4, %v3116_v28 }
 0x154   : > { %v2051_v53 = vpop.eup %2050  ;;  %1692 = vmatmul.mubr.bf16.gmra.mrb[4].mxu0 %v627_v47  ;;  %1732 = vmatpush3.bf16.msra.mxu1 %v1959_v38  ;;  %v1081_v58 = vpack.c.bf16 %v1074_v6, %v1073_v3  ;;  %v1076_v59 = vmul.f32 %v2049_v9, %v3123_v43 }
 0x155   : > { %v2053_v54 = vpop.eup %2052  ;;  %1708 = vmatpush3.bf16.msra.mxu0 %v1960_v62  ;;  %1725 = vmatprep.subr.bf16.mxu1 %v1960_v62  ;;  %v1077_v5 = vmul.f32 %v2051_v53, %v3129_v48 }
 0x156   : > { %v2055_v14 = vpop.eup %2054  ;;  %1709 = vmatprep.subr.bf16.mxu0 %v1961_v46  ;;  %1711 = vmatprep.mubr.bf16.mxu0 %v1081_v58  ;;  %v1078_v15 = vmul.f32 %v2053_v54, %v3134_v51  ;;  %v1082_v55 = vpack.c.bf16 %v1076_v59, %v1075_v13 }
 0x157   : > { %v2057_v21 = vpop.eup %2056  ;;  %v1079_v19 = vmul.f32 %v2055_v14, %v3138_v39 }
 0x158   : > { %1733 = vmatpush3.bf16.msra.mxu1 %v1960_v62  ;;  %v1083_v22 = vpack.c.bf16 %v1078_v15, %v1077_v5  ;;  %v1080_v28 = vmul.f32 %v2057_v21, %v3143_v12 }
 0x159   : > { %1710 = vmatpush3.bf16.msra.mxu0 %v1961_v46  ;;  %1726 = vmatprep.subr.bf16.mxu1 %v1961_v46 }
 0x15a   : > { %1715 = vmatprep.mubr.bf16.mxu1 %v1083_v22  ;;  %v1084_v43 = vpack.c.bf16 %v1080_v28, %v1079_v19 }
 0x15c   : > { %1734 = vmatpush3.bf16.msra.mxu1 %v1961_v46  ;;  %1712 = vmatmul.mubr.bf16.vlgmr.msra.gmra.mrb[0].mxu0 %v1082_v55 }
 0x15f   : > { %1716 = vmatmul.mubr.bf16.vlgmr.msra.gmra.mrb[8].mxu1 %v1084_v43 }
 0x212   : > { %v1665_v48 = vpop.f32.mrb[0].mxu1 }
 0x213   : > { %v842_v23 = vpop.f32.mrb[1].mxu1 }
 0x214   : > { %v1666_v24 = vpop.f32.mrb[2].mxu1 }
 0x215   : > { %v845_v51 = vpop.f32.mrb[3].mxu1 }
 0x224   : > { %v1669_v7 = vpop.f32.mrb[4].mxu1 }
 0x225   : > { %v858_v39 = vpop.f32.mrb[5].mxu1 }
 0x226   : > { %v1670_v25 = vpop.f32.mrb[6].mxu1 }
 0x227   : > { %v1693_v26 = vpop.f32.mrb[4].mxu0  ;;  %v861_v27 = vpop.f32.mrb[7].mxu1 }
 0x228   : > { %v980_v8 = vadd.f32 %v1693_v26, %v1669_v7  ;;  %v971_v12 = vpop.f32.mrb[5].mxu0 }
 0x229   : > { %v972_v16 = vadd.f32 %v971_v12, %v858_v39  ;;  %v1694_v29 = vpop.f32.mrb[6].mxu0 }
 0x22a   : > { %v983_v10 = vadd.f32 %v1694_v29, %v1670_v25  ;;  %v974_v30 = vpop.f32.mrb[7].mxu0 }
 0x22b   : > { %v975_v32 = vadd.f32 %v974_v30, %v861_v27 }
 0x22f   : > { %v1713_v11 = vpop.f32.mrb[0].mxu0 }
 0x230   : > { %v1735_v33 = vadd.f32 %v1713_v11, %v1665_v48  ;;  %v1184_v36 = vpop.f32.mrb[1].mxu0 }
 0x231   : > { %v1736_v37 = vadd.f32 %v1184_v36, %v842_v23  ;;  %v1714_v42 = vpop.f32.mrb[2].mxu0 }
 0x232   : > { %v1232_v17 = vadd.f32 %v1735_v33, %v1601_v2  ;;  %v1737_v34 = vadd.f32 %v1714_v42, %v1666_v24  ;;  %v1717_v44 = vpop.f32.mrb[8].mxu1  ;;  %v1187_v45 = vpop.f32.mrb[3].mxu0 }
 0x233   : > { %v1230_v49 = vadd.f32 %v1736_v37, %v1601_v2  ;;  %v1221_v50 = vadd.f32 %v1717_v44, %v980_v8  ;;  %v1738_v38 = vadd.f32 %v1187_v45, %v845_v51  ;;  %v1200_v56 = vpop.f32.mrb[9].mxu1 }
 0x234   : > { %1240 = vst [vmem:[%s3179_s6 + $0x10] sm:$0xff] %v1232_v17  ;;  %v1233_v31 = vadd.f32 %v1737_v34, %v1601_v2  ;;  %v1219_v20 = vadd.f32 %v1200_v56, %v972_v16  ;;  %v1718_v57 = vpop.f32.mrb[10].mxu1  ;;  %v1261_v3 = vmul.f32 %v1232_v17, %v1232_v17 }
 0x235   : > { %1238 = vst [vmem:[%s3179_s6] sm:$0xff] %v1230_v49  ;;  %v1236_v35 = vadd.f32 %v1601_v2, %v1221_v50  ;;  %v1231_v40 = vadd.f32 %v1738_v38, %v1601_v2  ;;  %v1222_v60 = vadd.f32 %v1718_v57, %v983_v10  ;;  %v1203_v61 = vpop.f32.mrb[11].mxu1  ;;  %v1259_v41 = vmul.f32 %v1230_v49, %v1230_v49 }
 0x236   : > { %1241 = vst [vmem:[%s3179_s6 + $0x18] sm:$0xff] %v1233_v31  ;;  %v1234_v62 = vadd.f32 %v1601_v2, %v1219_v20  ;;  %v1220_v63 = vadd.f32 %v1203_v61, %v975_v32  ;;  %v1262_v46 = vmul.f32 %v1233_v31, %v1233_v31 }
 0x237   : > { %1244 = vst [vmem:[%s3179_s6 + $0x30] sm:$0xff] %v1236_v35  ;;  %1239 = vst [vmem:[%s3179_s6 + $0x8] sm:$0xff] %v1231_v40  ;;  %v1246_v0 = vadd.f32 %v1231_v40, %v1230_v49  ;;  %v1260_v1 = vmul.f32 %v1231_v40, %v1231_v40  ;;  %v1237_v18 = vadd.f32 %v1601_v2, %v1222_v60 }
 0x238   : > { %1242 = vst [vmem:[%s3179_s6 + $0x20] sm:$0xff] %v1234_v62  ;;  %v1235_v52 = vadd.f32 %v1601_v2, %v1220_v63 }
 0x239   : > { %v1247_v4 = vadd.f32 %v1246_v0, %v1232_v17  ;;  %v1267_v47 = vadd.f32 %v1260_v1, %v1259_v41  ;;  %1245 = vst [vmem:[%s3179_s6 + $0x38] sm:$0xff] %v1237_v18 }
 0x23a   : > { %1243 = vst [vmem:[%s3179_s6 + $0x28] sm:$0xff] %v1235_v52 }
 0x23b   : > { %v1268_v6 = vadd.f32 %v1267_v47, %v1261_v3  ;;  %v1248_v9 = vadd.f32 %v1247_v4, %v1233_v31 }
 0x23c   : > { %2219 = shalt.err (!%p2216_p1)
}
 0x23d   : > { %s2220_s20 = scalar_lea.hbm %s3194_s8, 1024  ;;  %s2224_s11 = scalar_lea.hbm %s3432_s0, 8192 }
 0x23e   : > { %p2221_p8 = scmp.ne.s32.totalorder %s3194_s8, %s2220_s20  ;;  %p2225_p2 = scmp.lt.u32.totalorder %s3194_s8, %s3432_s0 }
 0x23f   : > { %p2226_p10 = scmp.lt.u32.totalorder %s2224_s11, %s2220_s20  ;;  %p2228_p11 = scmp.lt.u32.totalorder %s2220_s20, %s3194_s8 }
 0x240   : > { %p2222_p0 = pnand %p2221_p8, %p3433_p6 }
 0x241   : > { %p2227_p5 = por %p2226_p10, %p2225_p2 }
 0x242   : > { %p2223_p3 = pneg %p2222_p0 }
 0x243   : > { %p2229_p4 = por %p2228_p11, %p2227_p5 }
 0x245   : > { %p2230_p9 = pnand %p2229_p4, %p2223_p3 }
 0x247   : > { %2233 = shalt.err (!%p2230_p9)
}
 0x248   : > { %s2436_s17 = smov 128   ;;  %s2437_s19 = smov 8   ;;  %v1249_v53 = vadd.f32 %v1248_v9, %v1234_v62  ;;  %v1263_v58 = vmul.f32 %v1234_v62, %v1234_v62  ;;  %v1269_v13 = vadd.f32 %v1268_v6, %v1262_v46  ;;  %v1264_v5 = vmul.f32 %v1235_v52, %v1235_v52 }
 0x249   : > { %1763 = dma.vmem_to_hbm [thread:$0]  (%p3433_p6), %s3185_s3, 1024, %s3194_s8, %s1284_s23, %s2436_s17, %s2436_s17, %s2437_s19   ;;  %v1265_v14 = vmul.f32 %v1236_v35, %v1236_v35  ;;  %v1266_v19 = vmul.f32 %v1237_v18, %v1237_v18  ;;  %vm1280_vm0 = vcmask 1040384  }
 0x24a   : > { %v1270_v59 = vadd.f32 %v1269_v13, %v1263_v58  ;;  %v1250_v54 = vadd.f32 %v1249_v53, %v1235_v52  ;;  %s1552_s29 = sshll.u32 %s2928_s10, 1  ;;  %s1607_s26 = sshll.u32 %s3428_s18, 2 }
 0x24b   : > { %s1318_s6 = sadd.s32 %s3429_s24, %s1607_s26  ;;  %s511_s27 = scalar_lea.vmem [#allocation11], %s1552_s29 }
 0x24c   : > { %v1251_v15 = vadd.f32 %v1250_v54, %v1236_v35  ;;  %v1271_v21 = vadd.f32 %v1270_v59, %v1264_v5  ;;  %s1608_s3 = sshll.u32 %s1318_s6, 5  ;;  %s1322_s22 = sshll.u32 %s511_s27, 4  ;;  %s3230_s22 = int_to_ptr.vmem [resolvable:$true] %s1322_s22 }
 0x24d   : > { %s3434_s23 = sld [smem:[#allocation46_spill]]  ;;  %s1289_s18 = scalar_lea.sflag [#allocation12], %s2928_s10 }
 0x24e   : > { %v1252_v55 = vadd.f32 %v1251_v15, %v1237_v18  ;;  %v1272_v22 = vadd.f32 %v1271_v21, %v1265_v14  ;;  %s2234_s24 = scalar_lea.vmem %s3230_s22, 32  ;;  %s2438_s16 = smov [#allocation11]  }
 0x24f   : > { %p2235_p13 = scmp.ne.s32.totalorder %s3230_s22, %s2234_s24  ;;  %s2238_s25 = sshll.u32 %s2438_s16, 4  ;;  %s2239_s25 = int_to_ptr.vmem [resolvable:$false] %s2238_s25 }
 0x250   : > { %v1253_v28 = vrot.slane %v1252_v55, 4  ;;  %v1273_v43 = vadd.f32 %v1272_v22, %v1266_v19  ;;  %s2240_s13 = scalar_lea.vmem %s2239_s25, 64  ;;  %p2241_p1 = scmp.lt.s32.totalorder %s3230_s22, %s2239_s25 }
 0x251   : > { %p2236_p12 = pnand %p2235_p13, %p3433_p6  ;;  %p2242_p8 = scmp.lt.s32.totalorder %s2240_s13, %s2234_s24 }
 0x252   : > { %v1254_v48 = vadd.f32 %v1253_v28, %v1252_v55  ;;  %v1274_v23 = vrot.slane %v1273_v43, 4 }
 0x253   : > { %s3228_s7 = scalar_lea.hbm %s3434_s23, %s1608_s3  ;;  %p2237_p7 = pneg %p2236_p12 }
 0x254   : > { %v1255_v24 = vrot.slane %v1254_v48, 2  ;;  %v1275_v51 = vadd.f32 %v1274_v23, %v1273_v43  ;;  %p2243_p0 = por %p2242_p8, %p2241_p1 }
 0x256   : > { %v1256_v7 = vadd.f32 %v1255_v24, %v1254_v48  ;;  %v1276_v39 = vrot.slane %v1275_v51, 2  ;;  %p2244_p3 = pnand %p2243_p0, %p2237_p7 }
 0x258   : > { %v1257_v25 = vrot.slane %v1256_v7, 1  ;;  %v1277_v26 = vadd.f32 %v1276_v39, %v1275_v51 }
 0x25a   : > { %v1278_v27 = vrot.slane %v1277_v26, 1  ;;  %v1258_v8 = vadd.f32 %v1257_v25, %v1256_v7 }
 0x25c   : > { %v1279_v12 = vadd.f32 %v1278_v27, %v1277_v26 }
 0x25e   : > { %v1281_v16 = vsel %vm1280_vm0, %v1258_v8, %v1279_v12 }
 0x25f   : > { %1282 = vst [vmem:[%s511_s27] sm:$0x3] %v1281_v16 }
 0x260   : > { %2247 = shalt.err (!%p2244_p3)
}
 0x261   : > { %s2248_s10 = scalar_lea.hbm %s3228_s7, 32  ;;  %s2252_s14 = scalar_lea.hbm %s3434_s23, 256 }
 0x262   : > { %p2249_p2 = scmp.ne.s32.totalorder %s3228_s7, %s2248_s10  ;;  %p2253_p11 = scmp.lt.u32.totalorder %s3228_s7, %s3434_s23 }
 0x263   : > { %p2254_p4 = scmp.lt.u32.totalorder %s2252_s14, %s2248_s10  ;;  %p2256_p13 = scmp.lt.u32.totalorder %s2248_s10, %s3228_s7 }
 0x264   : > { %p2250_p10 = pnand %p2249_p2, %p3433_p6 }
 0x265   : > { %p2255_p9 = por %p2254_p4, %p2253_p11 }
 0x266   : > { %p2251_p5 = pneg %p2250_p10 }
 0x267   : > { %p2257_p12 = por %p2256_p13, %p2255_p9 }
 0x269   : > { %p2258_p7 = pnand %p2257_p12, %p2251_p5 }
 0x26b   : > { %2261 = shalt.err (!%p2258_p7)
}
 0x26c   : > { %1764 = dma.vmem_to_hbm [thread:$0]  (%p3433_p6), %s3230_s22, 32, %s3228_s7, %s1289_s18  }
 0x26d PF: > { %s3435_s5 = sld [smem:[#allocation24_spill]]  ;;  %s3436_s17 = sld [smem:[#allocation36_spill]] }
 0x26e   : > { %p1794_p1 = scmp.ge.s32.totalorder %s2424_s21, 2 }
 0x273   : > { %s1334_s19 = sand.u32 1, %s3435_s5   ;;  %p3437_p8 = scmp.ne.s32.totalorder %s3436_s17, 0 }
 0x274   : > { %s1335_s29 = scalar_lea.sflag [#allocation4], %s1334_s19 }
 0x275   : > { %p1785_p0 = pnand %p1794_p1, %p3437_p8 }
 0x277   : > { %2351 = dma.done.wait (!%p1785_p0), %s1335_s29, 1024  }
 0x278   : > { %2353 = vsyncadd (!%p1785_p0), %s1335_s29, 4294966272  ;;  %s1344_s26 = scalar_lea.sflag [#allocation12], %s1334_s19 }
 0x279   : > { %2355 = dma.done.wait (!%p1785_p0), %s1344_s26, 32  }
 0x27a   : > { %2357 = vsyncadd (!%p1785_p0), %s1344_s26, 4294967264  ;;  %s29_s21 = sadd.s32 1, %s2424_s21   ;;  %s3440_s27 = sld [smem:[#allocation21_spill]] }
 0x27b   : > { %p3259_p3 = scmp.ge.s32.totalorder %s29_s21, 10   ;;  %s3441_s28 = sld [smem:[#allocation22_spill]] }
 0x27c   : > { %s3442_s3 = sld [smem:[#allocation23_spill]]  ;;  %s3443_s10 = sld [smem:[#allocation37_spill]] }
 0x27d   : > { %s3444_s22 = sld [smem:[#allocation25_spill]]  ;;  %s3446_s14 = sld [smem:[#allocation26_spill]] }
 0x27e   : > { %s3445_s13 = sld [smem:[#allocation35_spill]]  ;;  %s3447_s4 = sld [smem:[#allocation27_spill]] }
 0x27f   : > { %s3448_s16 = sld [smem:[#allocation34_spill]]  ;;  %s3449_s17 = sld [smem:[#allocation30_spill]] }
 0x280   : > { %s3450_s18 = sld [smem:[#allocation31_spill]]  ;;  %s3451_s19 = sld [smem:[#allocation32_spill]] }
 0x281   : > { %s3452_s20 = sld [smem:[#allocation33_spill]]  ;;  %s3453_s29 = smov %s3472_s15 }
 0x282   : > { %s3454_s30 = smov %s2376_s9  ;;  %s3455_s9 = smov %s3442_s3 }
 0x283   : > { %s3456_s11 = smov %s2388_s12  ;;  %s3457_s12 = smov %s3444_s22 }
 0x284   : > { %s3458_s15 = smov %s3447_s4  ;;  %28 = sbr.rel (!%p3259_p3) target bundleno = 25 (0x19), region = 152 }
 0x28b   :  { %1349 = vsyncpa [#allocation3], 1 }
 0x28c   :  { %1351 = vsyncpa [#allocation3 + $0x1], 1 }
 0x28d   :  { %1352 = vsyncpa [#allocation6], 1 }
 0x28e   :  { %1353 = vsyncpa [#allocation4], 1 }
 0x28f   :  { %1355 = vsyncpa [#allocation4 + $0x1], 1 }
 0x290   :  { %1356 = vsyncpa [#allocation12], 1 }
 0x291   :  { %1358 = vsyncpa [#allocation12 + $0x1], 1 }

</bundles_post_ra>
